<compile_context>
chip_gen: v7x
topology: tpu7x:2x2x1
jax: 0.10.0
libtpu: 0.0.40
codegen_flags: <defaults>
</compile_context>

<pallas_src>
import jax
import jax.numpy as jnp
import numpy as np
from jax.experimental import pallas as pl
from jax.experimental.pallas import tpu as pltpu


# ------------------------------ fused forward kernel ------------------------------
def _make_fused_kernel(num_layers, seq_len, batch_pad, hidden):
    L, S, Bp, H = num_layers, seq_len, batch_pad, hidden

    def kernel(*refs):
        x_ref, h0_ref, c0_ref = refs[0:3]
        pos = 3
        layers = []
        for _ in range(L):
            layers.append(refs[pos:pos + 3])          # (w_ih_t, w_hh_t, bias)
            pos += 3
        wlin_ref, blin_ref = refs[pos], refs[pos + 1]
        pos += 2
        out_ref, hn_ref, cn_ref = refs[pos], refs[pos + 1], refs[pos + 2]
        pos += 3
        act_sc, gx_sc, h_sc, c_sc = refs[pos], refs[pos + 1], refs[pos + 2], refs[pos + 3]

        # Hoisted layer-0 input projection (+ combined bias): ONE big matmul over
        # all S*Bp time-major rows -- off the sequential critical path.
        w_ih0, _, b0 = layers[0]
        gx_sc[...] = (jnp.dot(x_ref[...].astype(jnp.float32), w_ih0[...],
                              preferred_element_type=jnp.float32)
                      + b0[...])

        # Per-layer recurrent state, resident in VMEM across the whole sequence.
        h_sc[...] = h0_ref[...].astype(jnp.float32)
        c_sc[...] = c0_ref[...].astype(jnp.float32)

        def lstm_cell(gates, c_prev):
            # One full-vreg sigmoid over the 4H=128-lane gate slab; tanh only on
            # the g slice.  PyTorch gate order: i, f, g, o.
            sig = jax.nn.sigmoid(gates)
            i_g = sig[:, 0 * H:1 * H]
            f_g = sig[:, 1 * H:2 * H]
            o_g = sig[:, 3 * H:4 * H]
            g_g = jnp.tanh(gates[:, 2 * H:3 * H])
            c_new = f_g * c_prev + i_g * g_g
            h_new = o_g * jnp.tanh(c_new)
            return h_new, c_new

        # Wavefront schedule: in wave w, layer l processes timestep t = w - l.
        # States are snapshot-read at wave start so the (up to) L layer-steps in
        # a wave are independent and can be overlapped by the scheduler.
        for w in range(S + L - 1):
            h_prev = [h_sc[l] for l in range(L)]
            c_prev = [c_sc[l] for l in range(L)]
            new_h = {}
            new_c = {}
            for l in range(L):
                t = w - l
                if not (0 <= t < S):
                    continue
                w_ih, w_hh, b = layers[l]
                if l == 0:
                    inp_gates = gx_sc[pl.ds(t * Bp, Bp), :]
                else:
                    # Input for layer l at step t is layer (l-1)'s output at step
                    # t, produced in wave w-1 and sitting in the snapshot.
                    inp_gates = (jnp.dot(h_prev[l - 1], w_ih[...],
                                         preferred_element_type=jnp.float32)
                                 + b[...])
                gates = inp_gates + jnp.dot(h_prev[l], w_hh[...],
                                            preferred_element_type=jnp.float32)
                h_new, c_new = lstm_cell(gates, c_prev[l])
                new_h[l] = h_new
                new_c[l] = c_new
                if l == L - 1:
                    act_sc[pl.ds(t * Bp, Bp), :] = h_new
            for l, v in new_h.items():
                h_sc[l] = v
            for l, v in new_c.items():
                c_sc[l] = v

        # Final states written once (not per timestep / per layer).
        hn_ref[...] = h_sc[...].astype(hn_ref.dtype)
        cn_ref[...] = c_sc[...].astype(cn_ref.dtype)

        # Fused Linear over all S*Bp rows: one dense matmul + one lane-dense
        # (128-lane padded) slab store.
        out_ref[...] = (jnp.dot(act_sc[...], wlin_ref[...],
                                preferred_element_type=jnp.float32)
                        + blin_ref[...]).astype(out_ref.dtype)

    return kernel


@jax.jit
def sherlock_forward(inputs, h0, c0, params):
    """inputs: (B, S, input_size) batch-first; h0/c0: (num_layers, B, H).
    Returns (logits (B, S, input_size), hn (L, B, H), cn (L, B, H))."""
    B, S, D_in = inputs.shape
    L = len(params["lstm"])
    H = h0.shape[-1]
    D_out = params["linear"]["w_t"].shape[-1]

    Bp = ((B + 7) // 8) * 8          # pad batch rows to a full sublane tile
    Dp = ((D_out + 127) // 128) * 128  # pad Linear output lanes to a full lane tile

    # Time-major row flatten + batch pad (small one-time XLA ops); keeps every
    # kernel-side access an aligned whole-sublane-tile 2-D slice.
    x_tm = jnp.transpose(inputs, (1, 0, 2))                  # (S, B, D_in)
    if Bp != B:
        x_tm = jnp.pad(x_tm, ((0, 0), (0, Bp - B), (0, 0)))
        h0_p = jnp.pad(h0, ((0, 0), (0, Bp - B), (0, 0)))
        c0_p = jnp.pad(c0, ((0, 0), (0, Bp - B), (0, 0)))
    else:
        h0_p, c0_p = h0, c0
    x_flat = x_tm.reshape(S * Bp, D_in)

    # Zero-pad Linear weight/bias columns so the output store is lane-dense.
    w_lin = params["linear"]["w_t"]          # (H, D_out)
    b_lin = params["linear"]["bias"]         # (1, D_out)
    if Dp != D_out:
        w_lin = jnp.pad(w_lin, ((0, 0), (0, Dp - D_out)))
        b_lin = jnp.pad(b_lin, ((0, 0), (0, Dp - D_out)))

    kernel = _make_fused_kernel(L, S, Bp, H)

    args = [x_flat, h0_p, c0_p]
    in_specs = [
        pl.BlockSpec((S * Bp, D_in), lambda i: (0, 0)),
        pl.BlockSpec((L, Bp, H), lambda i: (0, 0, 0)),
        pl.BlockSpec((L, Bp, H), lambda i: (0, 0, 0)),
    ]
    for layer, p in enumerate(params["lstm"]):
        d_l = D_in if layer == 0 else H
        args += [p["w_ih_t"], p["w_hh_t"], p["bias"]]
        in_specs += [
            pl.BlockSpec((d_l, 4 * H), lambda i: (0, 0)),
            pl.BlockSpec((H, 4 * H), lambda i: (0, 0)),
            pl.BlockSpec((1, 4 * H), lambda i: (0, 0)),
        ]
    args += [w_lin, b_lin]
    in_specs += [
        pl.BlockSpec((H, Dp), lambda i: (0, 0)),
        pl.BlockSpec((1, Dp), lambda i: (0, 0)),
    ]

    out_flat, hn_p, cn_p = pl.pallas_call(
        kernel,
        out_shape=(jax.ShapeDtypeStruct((S * Bp, Dp), inputs.dtype),
                   jax.ShapeDtypeStruct((L, Bp, H), inputs.dtype),
                   jax.ShapeDtypeStruct((L, Bp, H), inputs.dtype)),
        grid_spec=pltpu.PrefetchScalarGridSpec(
            num_scalar_prefetch=0,
            grid=(1,),
            in_specs=in_specs,
            out_specs=[
                pl.BlockSpec((S * Bp, Dp), lambda i: (0, 0)),
                pl.BlockSpec((L, Bp, H), lambda i: (0, 0, 0)),
                pl.BlockSpec((L, Bp, H), lambda i: (0, 0, 0)),
            ],
            scratch_shapes=[
                pltpu.VMEM((S * Bp, H), jnp.float32),      # last-layer activations (time-major)
                pltpu.VMEM((S * Bp, 4 * H), jnp.float32),  # hoisted layer-0 gate projections
                pltpu.VMEM((L, Bp, H), jnp.float32),       # per-layer hidden state
                pltpu.VMEM((L, Bp, H), jnp.float32),       # per-layer cell state
            ]),
        compiler_params=pltpu.CompilerParams(
            dimension_semantics=("arbitrary",)),
    )(*args)

    logits = jnp.transpose(out_flat.reshape(S, Bp, Dp)[:, :B, :D_out], (1, 0, 2))
    hn = hn_p[:, :B, :]
    cn = cn_p[:, :B, :]
    return logits, hn, cn


# ------------------------------ parameter init ------------------------------
def init_params(key, input_size, hidden_size, num_layers):
    """Deterministic PyTorch-style uniform(-1/sqrt(H), 1/sqrt(H)) init."""
    k = 1.0 / np.sqrt(hidden_size)
    params = {"lstm": []}
    for layer in range(num_layers):
        d_in = input_size if layer == 0 else hidden_size
        key, k1, k2, k3, k4 = jax.random.split(key, 5)
        w_ih = jax.random.uniform(k1, (4 * hidden_size, d_in), jnp.float32, -k, k)
        w_hh = jax.random.uniform(k2, (4 * hidden_size, hidden_size), jnp.float32, -k, k)
        b_ih = jax.random.uniform(k3, (4 * hidden_size,), jnp.float32, -k, k)
        b_hh = jax.random.uniform(k4, (4 * hidden_size,), jnp.float32, -k, k)
        params["lstm"].append(dict(
            w_ih_t=w_ih.T,                       # (d_in, 4H) for x @ W^T
            w_hh_t=w_hh.T,                       # (H, 4H)
            bias=(b_ih + b_hh)[None, :],         # (1, 4H)
        ))
    key, k1, k2 = jax.random.split(key, 3)
    kl = 1.0 / np.sqrt(hidden_size)
    w_lin = jax.random.uniform(k1, (input_size, hidden_size), jnp.float32, -kl, kl)
    b_lin = jax.random.uniform(k2, (input_size,), jnp.float32, -kl, kl)
    params["linear"] = dict(w_t=w_lin.T, bias=b_lin[None, :])
    return params


# ------------------------------ pure-JAX reference ------------------------------
def reference_forward(inputs, h0, c0, params):
    x = jnp.transpose(inputs, (1, 0, 2))
    hns, cns = [], []
    for layer, p in enumerate(params["lstm"]):
        H = h0.shape[-1]
        h, c = h0[layer], c0[layer]
        outs = []
        for t in range(x.shape[0]):
            gates = x[t] @ p["w_ih_t"] + h @ p["w_hh_t"] + p["bias"]
            i_g = jax.nn.sigmoid(gates[:, 0 * H:1 * H])
            f_g = jax.nn.sigmoid(gates[:, 1 * H:2 * H])
            g_g = jnp.tanh(gates[:, 2 * H:3 * H])
            o_g = jax.nn.sigmoid(gates[:, 3 * H:4 * H])
            c = f_g * c + i_g * g_g
            h = o_g * jnp.tanh(c)
            outs.append(h)
        x = jnp.stack(outs, axis=0)
        hns.append(h)
        cns.append(c)
    out = jnp.transpose(x, (1, 0, 2))
    logits = out @ params["linear"]["w_t"] + params["linear"]["bias"]
    return logits, jnp.stack(hns, 0), jnp.stack(cns, 0)


# ------------------------------------ main ------------------------------------
if __name__ == "__main__":
    B, S = 2, 8
    INPUT_SIZE, HIDDEN, LAYERS = 32, 32, 2

    key = jax.random.PRNGKey(0)
    key, kp, kx, kh, kc = jax.random.split(key, 5)

    params = init_params(kp, INPUT_SIZE, HIDDEN, LAYERS)
    inputs = jax.random.normal(kx, (B, S, INPUT_SIZE), jnp.float32)
    h0 = jax.random.normal(kh, (LAYERS, B, HIDDEN), jnp.float32)
    c0 = jax.random.normal(kc, (LAYERS, B, HIDDEN), jnp.float32)

    logits, hn, cn = sherlock_forward(inputs, h0, c0, params)
    jax.block_until_ready((logits, hn, cn))

    ref_logits, ref_hn, ref_cn = reference_forward(inputs, h0, c0, params)
    np.testing.assert_allclose(np.asarray(logits), np.asarray(ref_logits),
                               rtol=1e-5, atol=1e-5)
    np.testing.assert_allclose(np.asarray(hn), np.asarray(ref_hn),
                               rtol=1e-5, atol=1e-5)
    np.testing.assert_allclose(np.asarray(cn), np.asarray(ref_cn),
                               rtol=1e-5, atol=1e-5)

    assert logits.shape == (B, S, INPUT_SIZE)
    assert hn.shape == (LAYERS, B, HIDDEN) and cn.shape == (LAYERS, B, HIDDEN)
    print("KERNEL_OK")
</pallas_src>

<mosaic_0001>
module attributes {stable_mosaic.version = 11 : i64} {
  func.func @kernel(%arg0: i32, %arg1: memref<64x32xf32, #tpu.memory_space<vmem>>, %arg2: memref<2x8x32xf32, #tpu.memory_space<vmem>>, %arg3: memref<2x8x32xf32, #tpu.memory_space<vmem>>, %arg4: memref<32x128xf32, #tpu.memory_space<vmem>>, %arg5: memref<32x128xf32, #tpu.memory_space<vmem>>, %arg6: memref<1x128xf32, #tpu.memory_space<vmem>>, %arg7: memref<32x128xf32, #tpu.memory_space<vmem>>, %arg8: memref<32x128xf32, #tpu.memory_space<vmem>>, %arg9: memref<1x128xf32, #tpu.memory_space<vmem>>, %arg10: memref<32x128xf32, #tpu.memory_space<vmem>>, %arg11: memref<1x128xf32, #tpu.memory_space<vmem>>, %arg12: memref<64x128xf32, #tpu.memory_space<vmem>>, %arg13: memref<2x8x32xf32, #tpu.memory_space<vmem>>, %arg14: memref<2x8x32xf32, #tpu.memory_space<vmem>>, %arg15: memref<64x32xf32, #tpu.memory_space<vmem>>, %arg16: memref<64x128xf32, #tpu.memory_space<vmem>>, %arg17: memref<2x8x32xf32, #tpu.memory_space<vmem>>, %arg18: memref<2x8x32xf32, #tpu.memory_space<vmem>>) attributes {dimension_semantics = [#tpu.dimension_semantics<arbitrary>], iteration_bounds = array<i64: 1>, scalar_prefetch = 0 : i64, scratch_operands = 4 : i64, tpu.core_type = #tpu.core_type<tc>, window_params = [{pipeline_mode = #tpu.pipeline_mode<synchronous>, transform_indices = @transform_0, window_bounds = array<i64: 64, 32>}, {pipeline_mode = #tpu.pipeline_mode<synchronous>, transform_indices = @transform_1, window_bounds = array<i64: 2, 8, 32>}, {pipeline_mode = #tpu.pipeline_mode<synchronous>, transform_indices = @transform_2, window_bounds = array<i64: 2, 8, 32>}, {pipeline_mode = #tpu.pipeline_mode<synchronous>, transform_indices = @transform_3, window_bounds = array<i64: 32, 128>}, {pipeline_mode = #tpu.pipeline_mode<synchronous>, transform_indices = @transform_4, window_bounds = array<i64: 32, 128>}, {pipeline_mode = #tpu.pipeline_mode<synchronous>, transform_indices = @transform_5, window_bounds = array<i64: 1, 128>}, {pipeline_mode = #tpu.pipeline_mode<synchronous>, transform_indices = @transform_6, window_bounds = array<i64: 32, 128>}, {pipeline_mode = #tpu.pipeline_mode<synchronous>, transform_indices = @transform_7, window_bounds = array<i64: 32, 128>}, {pipeline_mode = #tpu.pipeline_mode<synchronous>, transform_indices = @transform_8, window_bounds = array<i64: 1, 128>}, {pipeline_mode = #tpu.pipeline_mode<synchronous>, transform_indices = @transform_9, window_bounds = array<i64: 32, 128>}, {pipeline_mode = #tpu.pipeline_mode<synchronous>, transform_indices = @transform_10, window_bounds = array<i64: 1, 128>}, {pipeline_mode = #tpu.pipeline_mode<synchronous>, transform_indices = @transform_11, window_bounds = array<i64: 64, 128>}, {pipeline_mode = #tpu.pipeline_mode<synchronous>, transform_indices = @transform_12, window_bounds = array<i64: 2, 8, 32>}, {pipeline_mode = #tpu.pipeline_mode<synchronous>, transform_indices = @transform_13, window_bounds = array<i64: 2, 8, 32>}]} {
    %c0 = arith.constant 0 : index
    %c0_0 = arith.constant 0 : index
    %0 = vector.load %arg1[%c0, %c0_0] : memref<64x32xf32, #tpu.memory_space<vmem>>, vector<64x32xf32>
    %c0_1 = arith.constant 0 : index
    %c0_2 = arith.constant 0 : index
    %1 = vector.load %arg4[%c0_1, %c0_2] : memref<32x128xf32, #tpu.memory_space<vmem>>, vector<32x128xf32>
    %cst = arith.constant dense<0.000000e+00> : vector<64x128xf32>
    %2 = tpu.matmul %0, %1, %cst {dimension_numbers = #tpu.dot_dimension_numbers<[1], [0], [0], [1], [0, 0, 1, 1], [], []>} : vector<64x32xf32>, vector<32x128xf32>, vector<64x128xf32> -> vector<64x128xf32>
    %c0_3 = arith.constant 0 : index
    %c0_4 = arith.constant 0 : index
    %3 = vector.load %arg6[%c0_3, %c0_4] : memref<1x128xf32, #tpu.memory_space<vmem>>, vector<1x128xf32>
    %4 = vector.broadcast %3 : vector<1x128xf32> to vector<64x128xf32>
    %5 = arith.addf %2, %4 : vector<64x128xf32>
    %c0_5 = arith.constant 0 : index
    %c0_6 = arith.constant 0 : index
    %6 = vector.load %arg16[%c0_5, %c0_6] : memref<64x128xf32, #tpu.memory_space<vmem>>, vector<64x128xf32>
    tpu.vector_store %arg16[%c0_5, %c0_6], %5 {strides = array<i32>} : memref<64x128xf32, #tpu.memory_space<vmem>>, vector<64x128xf32>,
    %c0_7 = arith.constant 0 : index
    %c0_8 = arith.constant 0 : index
    %c0_9 = arith.constant 0 : index
    %7 = vector.load %arg2[%c0_7, %c0_8, %c0_9] : memref<2x8x32xf32, #tpu.memory_space<vmem>>, vector<2x8x32xf32>
    %c0_10 = arith.constant 0 : index
    %c0_11 = arith.constant 0 : index
    %c0_12 = arith.constant 0 : index
    %8 = vector.load %arg17[%c0_10, %c0_11, %c0_12] : memref<2x8x32xf32, #tpu.memory_space<vmem>>, vector<2x8x32xf32>
    tpu.vector_store %arg17[%c0_10, %c0_11, %c0_12], %7 {strides = array<i32>} : memref<2x8x32xf32, #tpu.memory_space<vmem>>, vector<2x8x32xf32>,
    %c0_13 = arith.constant 0 : index
    %c0_14 = arith.constant 0 : index
    %c0_15 = arith.constant 0 : index
    %9 = vector.load %arg3[%c0_13, %c0_14, %c0_15] : memref<2x8x32xf32, #tpu.memory_space<vmem>>, vector<2x8x32xf32>
    %c0_16 = arith.constant 0 : index
    %c0_17 = arith.constant 0 : index
    %c0_18 = arith.constant 0 : index
    %10 = vector.load %arg18[%c0_16, %c0_17, %c0_18] : memref<2x8x32xf32, #tpu.memory_space<vmem>>, vector<2x8x32xf32>
    tpu.vector_store %arg18[%c0_16, %c0_17, %c0_18], %9 {strides = array<i32>} : memref<2x8x32xf32, #tpu.memory_space<vmem>>, vector<2x8x32xf32>,
    %c0_19 = arith.constant 0 : index
    %c0_20 = arith.constant 0 : index
    %c0_21 = arith.constant 0 : index
    %11 = vector.load %arg17[%c0_19, %c0_20, %c0_21] : memref<2x8x32xf32, #tpu.memory_space<vmem>>, vector<1x8x32xf32>
    %12 = vector.shape_cast %11 : vector<1x8x32xf32> to vector<8x32xf32>
    %c0_22 = arith.constant 0 : index
    %c0_23 = arith.constant 0 : index
    %c0_24 = arith.constant 0 : index
    %13 = vector.load %arg18[%c0_22, %c0_23, %c0_24] : memref<2x8x32xf32, #tpu.memory_space<vmem>>, vector<1x8x32xf32>
    %14 = vector.shape_cast %13 : vector<1x8x32xf32> to vector<8x32xf32>
    %c0_25 = arith.constant 0 : index
    %c0_26 = arith.constant 0 : index
    %15 = vector.load %arg16[%c0_25, %c0_26] : memref<64x128xf32, #tpu.memory_space<vmem>>, vector<8x128xf32>
    %c0_27 = arith.constant 0 : index
    %c0_28 = arith.constant 0 : index
    %16 = vector.load %arg5[%c0_27, %c0_28] : memref<32x128xf32, #tpu.memory_space<vmem>>, vector<32x128xf32>
    %cst_29 = arith.constant dense<0.000000e+00> : vector<8x128xf32>
    %17 = tpu.matmul %12, %16, %cst_29 {dimension_numbers = #tpu.dot_dimension_numbers<[1], [0], [0], [1], [0, 0, 1, 1], [], []>} : vector<8x32xf32>, vector<32x128xf32>, vector<8x128xf32> -> vector<8x128xf32>
    %18 = arith.addf %15, %17 : vector<8x128xf32>
    %19 = arith.negf %18 : vector<8x128xf32>
    %20 = math.exp %19 : vector<8x128xf32>
    %cst_30 = arith.constant 1.000000e+00 : f32
    %21 = vector.broadcast %cst_30 : f32 to vector<8x128xf32>
    %22 = arith.addf %21, %20 : vector<8x128xf32>
    %23 = arith.divf %21, %22 : vector<8x128xf32>
    %24 = vector.extract_strided_slice %23 {offsets = [0, 0], sizes = [8, 32], strides = [1, 1]} : vector<8x128xf32> to vector<8x32xf32>
    %25 = vector.extract_strided_slice %23 {offsets = [0, 32], sizes = [8, 32], strides = [1, 1]} : vector<8x128xf32> to vector<8x32xf32>
    %26 = vector.extract_strided_slice %23 {offsets = [0, 96], sizes = [8, 32], strides = [1, 1]} : vector<8x128xf32> to vector<8x32xf32>
    %27 = vector.extract_strided_slice %18 {offsets = [0, 64], sizes = [8, 32], strides = [1, 1]} : vector<8x128xf32> to vector<8x32xf32>
    %28 = math.tanh %27 : vector<8x32xf32>
    %29 = arith.mulf %25, %14 : vector<8x32xf32>
    %30 = arith.mulf %24, %28 : vector<8x32xf32>
    %31 = arith.addf %29, %30 : vector<8x32xf32>
    %32 = math.tanh %31 : vector<8x32xf32>
    %33 = arith.mulf %26, %32 : vector<8x32xf32>
    %c0_31 = arith.constant 0 : index
    %c0_32 = arith.constant 0 : index
    %c0_33 = arith.constant 0 : index
    %34 = vector.load %arg17[%c0_31, %c0_32, %c0_33] : memref<2x8x32xf32, #tpu.memory_space<vmem>>, vector<1x8x32xf32>
    %35 = vector.shape_cast %34 : vector<1x8x32xf32> to vector<8x32xf32>
    %36 = vector.shape_cast %33 : vector<8x32xf32> to vector<1x8x32xf32>
    tpu.vector_store %arg17[%c0_31, %c0_32, %c0_33], %36 {strides = array<i32>} : memref<2x8x32xf32, #tpu.memory_space<vmem>>, vector<1x8x32xf32>,
    %c0_34 = arith.constant 0 : index
    %c0_35 = arith.constant 0 : index
    %c0_36 = arith.constant 0 : index
    %37 = vector.load %arg18[%c0_34, %c0_35, %c0_36] : memref<2x8x32xf32, #tpu.memory_space<vmem>>, vector<1x8x32xf32>
    %38 = vector.shape_cast %37 : vector<1x8x32xf32> to vector<8x32xf32>
    %39 = vector.shape_cast %31 : vector<8x32xf32> to vector<1x8x32xf32>
    tpu.vector_store %arg18[%c0_34, %c0_35, %c0_36], %39 {strides = array<i32>} : memref<2x8x32xf32, #tpu.memory_space<vmem>>, vector<1x8x32xf32>,
    %c0_37 = arith.constant 0 : index
    %c0_38 = arith.constant 0 : index
    %c0_39 = arith.constant 0 : index
    %40 = vector.load %arg17[%c0_37, %c0_38, %c0_39] : memref<2x8x32xf32, #tpu.memory_space<vmem>>, vector<1x8x32xf32>
    %41 = vector.shape_cast %40 : vector<1x8x32xf32> to vector<8x32xf32>
    %c1 = arith.constant 1 : index
    %c0_40 = arith.constant 0 : index
    %c0_41 = arith.constant 0 : index
    %42 = vector.load %arg17[%c1, %c0_40, %c0_41] : memref<2x8x32xf32, #tpu.memory_space<vmem>>, vector<1x8x32xf32>
    %43 = vector.shape_cast %42 : vector<1x8x32xf32> to vector<8x32xf32>
    %c0_42 = arith.constant 0 : index
    %c0_43 = arith.constant 0 : index
    %c0_44 = arith.constant 0 : index
    %44 = vector.load %arg18[%c0_42, %c0_43, %c0_44] : memref<2x8x32xf32, #tpu.memory_space<vmem>>, vector<1x8x32xf32>
    %45 = vector.shape_cast %44 : vector<1x8x32xf32> to vector<8x32xf32>
    %c1_45 = arith.constant 1 : index
    %c0_46 = arith.constant 0 : index
    %c0_47 = arith.constant 0 : index
    %46 = vector.load %arg18[%c1_45, %c0_46, %c0_47] : memref<2x8x32xf32, #tpu.memory_space<vmem>>, vector<1x8x32xf32>
    %47 = vector.shape_cast %46 : vector<1x8x32xf32> to vector<8x32xf32>
    %c8 = arith.constant 8 : index
    %c0_48 = arith.constant 0 : index
    %48 = vector.load %arg16[%c8, %c0_48] : memref<64x128xf32, #tpu.memory_space<vmem>>, vector<8x128xf32>
    %c0_49 = arith.constant 0 : index
    %c0_50 = arith.constant 0 : index
    %49 = vector.load %arg5[%c0_49, %c0_50] : memref<32x128xf32, #tpu.memory_space<vmem>>, vector<32x128xf32>
    %cst_51 = arith.constant dense<0.000000e+00> : vector<8x128xf32>
    %50 = tpu.matmul %41, %49, %cst_51 {dimension_numbers = #tpu.dot_dimension_numbers<[1], [0], [0], [1], [0, 0, 1, 1], [], []>} : vector<8x32xf32>, vector<32x128xf32>, vector<8x128xf32> -> vector<8x128xf32>
    %51 = arith.addf %48, %50 : vector<8x128xf32>
    %52 = arith.negf %51 : vector<8x128xf32>
    %53 = math.exp %52 : vector<8x128xf32>
    %cst_52 = arith.constant 1.000000e+00 : f32
    %54 = vector.broadcast %cst_52 : f32 to vector<8x128xf32>
    %55 = arith.addf %54, %53 : vector<8x128xf32>
    %56 = arith.divf %54, %55 : vector<8x128xf32>
    %57 = vector.extract_strided_slice %56 {offsets = [0, 0], sizes = [8, 32], strides = [1, 1]} : vector<8x128xf32> to vector<8x32xf32>
    %58 = vector.extract_strided_slice %56 {offsets = [0, 32], sizes = [8, 32], strides = [1, 1]} : vector<8x128xf32> to vector<8x32xf32>
    %59 = vector.extract_strided_slice %56 {offsets = [0, 96], sizes = [8, 32], strides = [1, 1]} : vector<8x128xf32> to vector<8x32xf32>
    %60 = vector.extract_strided_slice %51 {offsets = [0, 64], sizes = [8, 32], strides = [1, 1]} : vector<8x128xf32> to vector<8x32xf32>
    %61 = math.tanh %60 : vector<8x32xf32>
    %62 = arith.mulf %58, %45 : vector<8x32xf32>
    %63 = arith.mulf %57, %61 : vector<8x32xf32>
    %64 = arith.addf %62, %63 : vector<8x32xf32>
    %65 = math.tanh %64 : vector<8x32xf32>
    %66 = arith.mulf %59, %65 : vector<8x32xf32>
    %c0_53 = arith.constant 0 : index
    %c0_54 = arith.constant 0 : index
    %67 = vector.load %arg7[%c0_53, %c0_54] : memref<32x128xf32, #tpu.memory_space<vmem>>, vector<32x128xf32>
    %cst_55 = arith.constant dense<0.000000e+00> : vector<8x128xf32>
    %68 = tpu.matmul %41, %67, %cst_55 {dimension_numbers = #tpu.dot_dimension_numbers<[1], [0], [0], [1], [0, 0, 1, 1], [], []>} : vector<8x32xf32>, vector<32x128xf32>, vector<8x128xf32> -> vector<8x128xf32>
    %c0_56 = arith.constant 0 : index
    %c0_57 = arith.constant 0 : index
    %69 = vector.load %arg9[%c0_56, %c0_57] : memref<1x128xf32, #tpu.memory_space<vmem>>, vector<1x128xf32>
    %70 = vector.broadcast %69 : vector<1x128xf32> to vector<8x128xf32>
    %71 = arith.addf %68, %70 : vector<8x128xf32>
    %c0_58 = arith.constant 0 : index
    %c0_59 = arith.constant 0 : index
    %72 = vector.load %arg8[%c0_58, %c0_59] : memref<32x128xf32, #tpu.memory_space<vmem>>, vector<32x128xf32>
    %cst_60 = arith.constant dense<0.000000e+00> : vector<8x128xf32>
    %73 = tpu.matmul %43, %72, %cst_60 {dimension_numbers = #tpu.dot_dimension_numbers<[1], [0], [0], [1], [0, 0, 1, 1], [], []>} : vector<8x32xf32>, vector<32x128xf32>, vector<8x128xf32> -> vector<8x128xf32>
    %74 = arith.addf %71, %73 : vector<8x128xf32>
    %75 = arith.negf %74 : vector<8x128xf32>
    %76 = math.exp %75 : vector<8x128xf32>
    %cst_61 = arith.constant 1.000000e+00 : f32
    %77 = vector.broadcast %cst_61 : f32 to vector<8x128xf32>
    %78 = arith.addf %77, %76 : vector<8x128xf32>
    %79 = arith.divf %77, %78 : vector<8x128xf32>
    %80 = vector.extract_strided_slice %79 {offsets = [0, 0], sizes = [8, 32], strides = [1, 1]} : vector<8x128xf32> to vector<8x32xf32>
    %81 = vector.extract_strided_slice %79 {offsets = [0, 32], sizes = [8, 32], strides = [1, 1]} : vector<8x128xf32> to vector<8x32xf32>
    %82 = vector.extract_strided_slice %79 {offsets = [0, 96], sizes = [8, 32], strides = [1, 1]} : vector<8x128xf32> to vector<8x32xf32>
    %83 = vector.extract_strided_slice %74 {offsets = [0, 64], sizes = [8, 32], strides = [1, 1]} : vector<8x128xf32> to vector<8x32xf32>
    %84 = math.tanh %83 : vector<8x32xf32>
    %85 = arith.mulf %81, %47 : vector<8x32xf32>
    %86 = arith.mulf %80, %84 : vector<8x32xf32>
    %87 = arith.addf %85, %86 : vector<8x32xf32>
    %88 = math.tanh %87 : vector<8x32xf32>
    %89 = arith.mulf %82, %88 : vector<8x32xf32>
    %c0_62 = arith.constant 0 : index
    %c0_63 = arith.constant 0 : index
    %90 = vector.load %arg15[%c0_62, %c0_63] : memref<64x32xf32, #tpu.memory_space<vmem>>, vector<8x32xf32>
    tpu.vector_store %arg15[%c0_62, %c0_63], %89 {strides = array<i32>} : memref<64x32xf32, #tpu.memory_space<vmem>>, vector<8x32xf32>,
    %c0_64 = arith.constant 0 : index
    %c0_65 = arith.constant 0 : index
    %c0_66 = arith.constant 0 : index
    %91 = vector.load %arg17[%c0_64, %c0_65, %c0_66] : memref<2x8x32xf32, #tpu.memory_space<vmem>>, vector<1x8x32xf32>
    %92 = vector.shape_cast %91 : vector<1x8x32xf32> to vector<8x32xf32>
    %93 = vector.shape_cast %66 : vector<8x32xf32> to vector<1x8x32xf32>
    tpu.vector_store %arg17[%c0_64, %c0_65, %c0_66], %93 {strides = array<i32>} : memref<2x8x32xf32, #tpu.memory_space<vmem>>, vector<1x8x32xf32>,
    %c1_67 = arith.constant 1 : index
    %c0_68 = arith.constant 0 : index
    %c0_69 = arith.constant 0 : index
    %94 = vector.load %arg17[%c1_67, %c0_68, %c0_69] : memref<2x8x32xf32, #tpu.memory_space<vmem>>, vector<1x8x32xf32>
    %95 = vector.shape_cast %94 : vector<1x8x32xf32> to vector<8x32xf32>
    %96 = vector.shape_cast %89 : vector<8x32xf32> to vector<1x8x32xf32>
    tpu.vector_store %arg17[%c1_67, %c0_68, %c0_69], %96 {strides = array<i32>} : memref<2x8x32xf32, #tpu.memory_space<vmem>>, vector<1x8x32xf32>,
    %c0_70 = arith.constant 0 : index
    %c0_71 = arith.constant 0 : index
    %c0_72 = arith.constant 0 : index
    %97 = vector.load %arg18[%c0_70, %c0_71, %c0_72] : memref<2x8x32xf32, #tpu.memory_space<vmem>>, vector<1x8x32xf32>
    %98 = vector.shape_cast %97 : vector<1x8x32xf32> to vector<8x32xf32>
    %99 = vector.shape_cast %64 : vector<8x32xf32> to vector<1x8x32xf32>
    tpu.vector_store %arg18[%c0_70, %c0_71, %c0_72], %99 {strides = array<i32>} : memref<2x8x32xf32, #tpu.memory_space<vmem>>, vector<1x8x32xf32>,
    %c1_73 = arith.constant 1 : index
    %c0_74 = arith.constant 0 : index
    %c0_75 = arith.constant 0 : index
    %100 = vector.load %arg18[%c1_73, %c0_74, %c0_75] : memref<2x8x32xf32, #tpu.memory_space<vmem>>, vector<1x8x32xf32>
    %101 = vector.shape_cast %100 : vector<1x8x32xf32> to vector<8x32xf32>
    %102 = vector.shape_cast %87 : vector<8x32xf32> to vector<1x8x32xf32>
    tpu.vector_store %arg18[%c1_73, %c0_74, %c0_75], %102 {strides = array<i32>} : memref<2x8x32xf32, #tpu.memory_space<vmem>>, vector<1x8x32xf32>,
    %c0_76 = arith.constant 0 : index
    %c0_77 = arith.constant 0 : index
    %c0_78 = arith.constant 0 : index
    %103 = vector.load %arg17[%c0_76, %c0_77, %c0_78] : memref<2x8x32xf32, #tpu.memory_space<vmem>>, vector<1x8x32xf32>
    %104 = vector.shape_cast %103 : vector<1x8x32xf32> to vector<8x32xf32>
    %c1_79 = arith.constant 1 : index
    %c0_80 = arith.constant 0 : index
    %c0_81 = arith.constant 0 : index
    %105 = vector.load %arg17[%c1_79, %c0_80, %c0_81] : memref<2x8x32xf32, #tpu.memory_space<vmem>>, vector<1x8x32xf32>
    %106 = vector.shape_cast %105 : vector<1x8x32xf32> to vector<8x32xf32>
    %c0_82 = arith.constant 0 : index
    %c0_83 = arith.constant 0 : index
    %c0_84 = arith.constant 0 : index
    %107 = vector.load %arg18[%c0_82, %c0_83, %c0_84] : memref<2x8x32xf32, #tpu.memory_space<vmem>>, vector<1x8x32xf32>
    %108 = vector.shape_cast %107 : vector<1x8x32xf32> to vector<8x32xf32>
    %c1_85 = arith.constant 1 : index
    %c0_86 = arith.constant 0 : index
    %c0_87 = arith.constant 0 : index
    %109 = vector.load %arg18[%c1_85, %c0_86, %c0_87] : memref<2x8x32xf32, #tpu.memory_space<vmem>>, vector<1x8x32xf32>
    %110 = vector.shape_cast %109 : vector<1x8x32xf32> to vector<8x32xf32>
    %c16 = arith.constant 16 : index
    %c0_88 = arith.constant 0 : index
    %111 = vector.load %arg16[%c16, %c0_88] : memref<64x128xf32, #tpu.memory_space<vmem>>, vector<8x128xf32>
    %c0_89 = arith.constant 0 : index
    %c0_90 = arith.constant 0 : index
    %112 = vector.load %arg5[%c0_89, %c0_90] : memref<32x128xf32, #tpu.memory_space<vmem>>, vector<32x128xf32>
    %cst_91 = arith.constant dense<0.000000e+00> : vector<8x128xf32>
    %113 = tpu.matmul %104, %112, %cst_91 {dimension_numbers = #tpu.dot_dimension_numbers<[1], [0], [0], [1], [0, 0, 1, 1], [], []>} : vector<8x32xf32>, vector<32x128xf32>, vector<8x128xf32> -> vector<8x128xf32>
    %114 = arith.addf %111, %113 : vector<8x128xf32>
    %115 = arith.negf %114 : vector<8x128xf32>
    %116 = math.exp %115 : vector<8x128xf32>
    %cst_92 = arith.constant 1.000000e+00 : f32
    %117 = vector.broadcast %cst_92 : f32 to vector<8x128xf32>
    %118 = arith.addf %117, %116 : vector<8x128xf32>
    %119 = arith.divf %117, %118 : vector<8x128xf32>
    %120 = vector.extract_strided_slice %119 {offsets = [0, 0], sizes = [8, 32], strides = [1, 1]} : vector<8x128xf32> to vector<8x32xf32>
    %121 = vector.extract_strided_slice %119 {offsets = [0, 32], sizes = [8, 32], strides = [1, 1]} : vector<8x128xf32> to vector<8x32xf32>
    %122 = vector.extract_strided_slice %119 {offsets = [0, 96], sizes = [8, 32], strides = [1, 1]} : vector<8x128xf32> to vector<8x32xf32>
    %123 = vector.extract_strided_slice %114 {offsets = [0, 64], sizes = [8, 32], strides = [1, 1]} : vector<8x128xf32> to vector<8x32xf32>
    %124 = math.tanh %123 : vector<8x32xf32>
    %125 = arith.mulf %121, %108 : vector<8x32xf32>
    %126 = arith.mulf %120, %124 : vector<8x32xf32>
    %127 = arith.addf %125, %126 : vector<8x32xf32>
    %128 = math.tanh %127 : vector<8x32xf32>
    %129 = arith.mulf %122, %128 : vector<8x32xf32>
    %c0_93 = arith.constant 0 : index
    %c0_94 = arith.constant 0 : index
    %130 = vector.load %arg7[%c0_93, %c0_94] : memref<32x128xf32, #tpu.memory_space<vmem>>, vector<32x128xf32>
    %cst_95 = arith.constant dense<0.000000e+00> : vector<8x128xf32>
    %131 = tpu.matmul %104, %130, %cst_95 {dimension_numbers = #tpu.dot_dimension_numbers<[1], [0], [0], [1], [0, 0, 1, 1], [], []>} : vector<8x32xf32>, vector<32x128xf32>, vector<8x128xf32> -> vector<8x128xf32>
    %c0_96 = arith.constant 0 : index
    %c0_97 = arith.constant 0 : index
    %132 = vector.load %arg9[%c0_96, %c0_97] : memref<1x128xf32, #tpu.memory_space<vmem>>, vector<1x128xf32>
    %133 = vector.broadcast %132 : vector<1x128xf32> to vector<8x128xf32>
    %134 = arith.addf %131, %133 : vector<8x128xf32>
    %c0_98 = arith.constant 0 : index
    %c0_99 = arith.constant 0 : index
    %135 = vector.load %arg8[%c0_98, %c0_99] : memref<32x128xf32, #tpu.memory_space<vmem>>, vector<32x128xf32>
    %cst_100 = arith.constant dense<0.000000e+00> : vector<8x128xf32>
    %136 = tpu.matmul %106, %135, %cst_100 {dimension_numbers = #tpu.dot_dimension_numbers<[1], [0], [0], [1], [0, 0, 1, 1], [], []>} : vector<8x32xf32>, vector<32x128xf32>, vector<8x128xf32> -> vector<8x128xf32>
    %137 = arith.addf %134, %136 : vector<8x128xf32>
    %138 = arith.negf %137 : vector<8x128xf32>
    %139 = math.exp %138 : vector<8x128xf32>
    %cst_101 = arith.constant 1.000000e+00 : f32
    %140 = vector.broadcast %cst_101 : f32 to vector<8x128xf32>
    %141 = arith.addf %140, %139 : vector<8x128xf32>
    %142 = arith.divf %140, %141 : vector<8x128xf32>
    %143 = vector.extract_strided_slice %142 {offsets = [0, 0], sizes = [8, 32], strides = [1, 1]} : vector<8x128xf32> to vector<8x32xf32>
    %144 = vector.extract_strided_slice %142 {offsets = [0, 32], sizes = [8, 32], strides = [1, 1]} : vector<8x128xf32> to vector<8x32xf32>
    %145 = vector.extract_strided_slice %142 {offsets = [0, 96], sizes = [8, 32], strides = [1, 1]} : vector<8x128xf32> to vector<8x32xf32>
    %146 = vector.extract_strided_slice %137 {offsets = [0, 64], sizes = [8, 32], strides = [1, 1]} : vector<8x128xf32> to vector<8x32xf32>
    %147 = math.tanh %146 : vector<8x32xf32>
    %148 = arith.mulf %144, %110 : vector<8x32xf32>
    %149 = arith.mulf %143, %147 : vector<8x32xf32>
    %150 = arith.addf %148, %149 : vector<8x32xf32>
    %151 = math.tanh %150 : vector<8x32xf32>
    %152 = arith.mulf %145, %151 : vector<8x32xf32>
    %c8_102 = arith.constant 8 : index
    %c0_103 = arith.constant 0 : index
    %153 = vector.load %arg15[%c8_102, %c0_103] : memref<64x32xf32, #tpu.memory_space<vmem>>, vector<8x32xf32>
    tpu.vector_store %arg15[%c8_102, %c0_103], %152 {strides = array<i32>} : memref<64x32xf32, #tpu.memory_space<vmem>>, vector<8x32xf32>,
    %c0_104 = arith.constant 0 : index
    %c0_105 = arith.constant 0 : index
    %c0_106 = arith.constant 0 : index
    %154 = vector.load %arg17[%c0_104, %c0_105, %c0_106] : memref<2x8x32xf32, #tpu.memory_space<vmem>>, vector<1x8x32xf32>
    %155 = vector.shape_cast %154 : vector<1x8x32xf32> to vector<8x32xf32>
    %156 = vector.shape_cast %129 : vector<8x32xf32> to vector<1x8x32xf32>
    tpu.vector_store %arg17[%c0_104, %c0_105, %c0_106], %156 {strides = array<i32>} : memref<2x8x32xf32, #tpu.memory_space<vmem>>, vector<1x8x32xf32>,
    %c1_107 = arith.constant 1 : index
    %c0_108 = arith.constant 0 : index
    %c0_109 = arith.constant 0 : index
    %157 = vector.load %arg17[%c1_107, %c0_108, %c0_109] : memref<2x8x32xf32, #tpu.memory_space<vmem>>, vector<1x8x32xf32>
    %158 = vector.shape_cast %157 : vector<1x8x32xf32> to vector<8x32xf32>
    %159 = vector.shape_cast %152 : vector<8x32xf32> to vector<1x8x32xf32>
    tpu.vector_store %arg17[%c1_107, %c0_108, %c0_109], %159 {strides = array<i32>} : memref<2x8x32xf32, #tpu.memory_space<vmem>>, vector<1x8x32xf32>,
    %c0_110 = arith.constant 0 : index
    %c0_111 = arith.constant 0 : index
    %c0_112 = arith.constant 0 : index
    %160 = vector.load %arg18[%c0_110, %c0_111, %c0_112] : memref<2x8x32xf32, #tpu.memory_space<vmem>>, vector<1x8x32xf32>
    %161 = vector.shape_cast %160 : vector<1x8x32xf32> to vector<8x32xf32>
    %162 = vector.shape_cast %127 : vector<8x32xf32> to vector<1x8x32xf32>
    tpu.vector_store %arg18[%c0_110, %c0_111, %c0_112], %162 {strides = array<i32>} : memref<2x8x32xf32, #tpu.memory_space<vmem>>, vector<1x8x32xf32>,
    %c1_113 = arith.constant 1 : index
    %c0_114 = arith.constant 0 : index
    %c0_115 = arith.constant 0 : index
    %163 = vector.load %arg18[%c1_113, %c0_114, %c0_115] : memref<2x8x32xf32, #tpu.memory_space<vmem>>, vector<1x8x32xf32>
    %164 = vector.shape_cast %163 : vector<1x8x32xf32> to vector<8x32xf32>
    %165 = vector.shape_cast %150 : vector<8x32xf32> to vector<1x8x32xf32>
    tpu.vector_store %arg18[%c1_113, %c0_114, %c0_115], %165 {strides = array<i32>} : memref<2x8x32xf32, #tpu.memory_space<vmem>>, vector<1x8x32xf32>,
    %c0_116 = arith.constant 0 : index
    %c0_117 = arith.constant 0 : index
    %c0_118 = arith.constant 0 : index
    %166 = vector.load %arg17[%c0_116, %c0_117, %c0_118] : memref<2x8x32xf32, #tpu.memory_space<vmem>>, vector<1x8x32xf32>
    %167 = vector.shape_cast %166 : vector<1x8x32xf32> to vector<8x32xf32>
    %c1_119 = arith.constant 1 : index
    %c0_120 = arith.constant 0 : index
    %c0_121 = arith.constant 0 : index
    %168 = vector.load %arg17[%c1_119, %c0_120, %c0_121] : memref<2x8x32xf32, #tpu.memory_space<vmem>>, vector<1x8x32xf32>
    %169 = vector.shape_cast %168 : vector<1x8x32xf32> to vector<8x32xf32>
    %c0_122 = arith.constant 0 : index
    %c0_123 = arith.constant 0 : index
    %c0_124 = arith.constant 0 : index
    %170 = vector.load %arg18[%c0_122, %c0_123, %c0_124] : memref<2x8x32xf32, #tpu.memory_space<vmem>>, vector<1x8x32xf32>
    %171 = vector.shape_cast %170 : vector<1x8x32xf32> to vector<8x32xf32>
    %c1_125 = arith.constant 1 : index
    %c0_126 = arith.constant 0 : index
    %c0_127 = arith.constant 0 : index
    %172 = vector.load %arg18[%c1_125, %c0_126, %c0_127] : memref<2x8x32xf32, #tpu.memory_space<vmem>>, vector<1x8x32xf32>
    %173 = vector.shape_cast %172 : vector<1x8x32xf32> to vector<8x32xf32>
    %c24 = arith.constant 24 : index
    %c0_128 = arith.constant 0 : index
    %174 = vector.load %arg16[%c24, %c0_128] : memref<64x128xf32, #tpu.memory_space<vmem>>, vector<8x128xf32>
    %c0_129 = arith.constant 0 : index
    %c0_130 = arith.constant 0 : index
    %175 = vector.load %arg5[%c0_129, %c0_130] : memref<32x128xf32, #tpu.memory_space<vmem>>, vector<32x128xf32>
    %cst_131 = arith.constant dense<0.000000e+00> : vector<8x128xf32>
    %176 = tpu.matmul %167, %175, %cst_131 {dimension_numbers = #tpu.dot_dimension_numbers<[1], [0], [0], [1], [0, 0, 1, 1], [], []>} : vector<8x32xf32>, vector<32x128xf32>, vector<8x128xf32> -> vector<8x128xf32>
    %177 = arith.addf %174, %176 : vector<8x128xf32>
    %178 = arith.negf %177 : vector<8x128xf32>
    %179 = math.exp %178 : vector<8x128xf32>
    %cst_132 = arith.constant 1.000000e+00 : f32
    %180 = vector.broadcast %cst_132 : f32 to vector<8x128xf32>
    %181 = arith.addf %180, %179 : vector<8x128xf32>
    %182 = arith.divf %180, %181 : vector<8x128xf32>
    %183 = vector.extract_strided_slice %182 {offsets = [0, 0], sizes = [8, 32], strides = [1, 1]} : vector<8x128xf32> to vector<8x32xf32>
    %184 = vector.extract_strided_slice %182 {offsets = [0, 32], sizes = [8, 32], strides = [1, 1]} : vector<8x128xf32> to vector<8x32xf32>
    %185 = vector.extract_strided_slice %182 {offsets = [0, 96], sizes = [8, 32], strides = [1, 1]} : vector<8x128xf32> to vector<8x32xf32>
    %186 = vector.extract_strided_slice %177 {offsets = [0, 64], sizes = [8, 32], strides = [1, 1]} : vector<8x128xf32> to vector<8x32xf32>
    %187 = math.tanh %186 : vector<8x32xf32>
    %188 = arith.mulf %184, %171 : vector<8x32xf32>
    %189 = arith.mulf %183, %187 : vector<8x32xf32>
    %190 = arith.addf %188, %189 : vector<8x32xf32>
    %191 = math.tanh %190 : vector<8x32xf32>
    %192 = arith.mulf %185, %191 : vector<8x32xf32>
    %c0_133 = arith.constant 0 : index
    %c0_134 = arith.constant 0 : index
    %193 = vector.load %arg7[%c0_133, %c0_134] : memref<32x128xf32, #tpu.memory_space<vmem>>, vector<32x128xf32>
    %cst_135 = arith.constant dense<0.000000e+00> : vector<8x128xf32>
    %194 = tpu.matmul %167, %193, %cst_135 {dimension_numbers = #tpu.dot_dimension_numbers<[1], [0], [0], [1], [0, 0, 1, 1], [], []>} : vector<8x32xf32>, vector<32x128xf32>, vector<8x128xf32> -> vector<8x128xf32>
    %c0_136 = arith.constant 0 : index
    %c0_137 = arith.constant 0 : index
    %195 = vector.load %arg9[%c0_136, %c0_137] : memref<1x128xf32, #tpu.memory_space<vmem>>, vector<1x128xf32>
    %196 = vector.broadcast %195 : vector<1x128xf32> to vector<8x128xf32>
    %197 = arith.addf %194, %196 : vector<8x128xf32>
    %c0_138 = arith.constant 0 : index
    %c0_139 = arith.constant 0 : index
    %198 = vector.load %arg8[%c0_138, %c0_139] : memref<32x128xf32, #tpu.memory_space<vmem>>, vector<32x128xf32>
    %cst_140 = arith.constant dense<0.000000e+00> : vector<8x128xf32>
    %199 = tpu.matmul %169, %198, %cst_140 {dimension_numbers = #tpu.dot_dimension_numbers<[1], [0], [0], [1], [0, 0, 1, 1], [], []>} : vector<8x32xf32>, vector<32x128xf32>, vector<8x128xf32> -> vector<8x128xf32>
    %200 = arith.addf %197, %199 : vector<8x128xf32>
    %201 = arith.negf %200 : vector<8x128xf32>
    %202 = math.exp %201 : vector<8x128xf32>
    %cst_141 = arith.constant 1.000000e+00 : f32
    %203 = vector.broadcast %cst_141 : f32 to vector<8x128xf32>
    %204 = arith.addf %203, %202 : vector<8x128xf32>
    %205 = arith.divf %203, %204 : vector<8x128xf32>
    %206 = vector.extract_strided_slice %205 {offsets = [0, 0], sizes = [8, 32], strides = [1, 1]} : vector<8x128xf32> to vector<8x32xf32>
    %207 = vector.extract_strided_slice %205 {offsets = [0, 32], sizes = [8, 32], strides = [1, 1]} : vector<8x128xf32> to vector<8x32xf32>
    %208 = vector.extract_strided_slice %205 {offsets = [0, 96], sizes = [8, 32], strides = [1, 1]} : vector<8x128xf32> to vector<8x32xf32>
    %209 = vector.extract_strided_slice %200 {offsets = [0, 64], sizes = [8, 32], strides = [1, 1]} : vector<8x128xf32> to vector<8x32xf32>
    %210 = math.tanh %209 : vector<8x32xf32>
    %211 = arith.mulf %207, %173 : vector<8x32xf32>
    %212 = arith.mulf %206, %210 : vector<8x32xf32>
    %213 = arith.addf %211, %212 : vector<8x32xf32>
    %214 = math.tanh %213 : vector<8x32xf32>
    %215 = arith.mulf %208, %214 : vector<8x32xf32>
    %c16_142 = arith.constant 16 : index
    %c0_143 = arith.constant 0 : index
    %216 = vector.load %arg15[%c16_142, %c0_143] : memref<64x32xf32, #tpu.memory_space<vmem>>, vector<8x32xf32>
    tpu.vector_store %arg15[%c16_142, %c0_143], %215 {strides = array<i32>} : memref<64x32xf32, #tpu.memory_space<vmem>>, vector<8x32xf32>,
    %c0_144 = arith.constant 0 : index
    %c0_145 = arith.constant 0 : index
    %c0_146 = arith.constant 0 : index
    %217 = vector.load %arg17[%c0_144, %c0_145, %c0_146] : memref<2x8x32xf32, #tpu.memory_space<vmem>>, vector<1x8x32xf32>
    %218 = vector.shape_cast %217 : vector<1x8x32xf32> to vector<8x32xf32>
    %219 = vector.shape_cast %192 : vector<8x32xf32> to vector<1x8x32xf32>
    tpu.vector_store %arg17[%c0_144, %c0_145, %c0_146], %219 {strides = array<i32>} : memref<2x8x32xf32, #tpu.memory_space<vmem>>, vector<1x8x32xf32>,
    %c1_147 = arith.constant 1 : index
    %c0_148 = arith.constant 0 : index
    %c0_149 = arith.constant 0 : index
    %220 = vector.load %arg17[%c1_147, %c0_148, %c0_149] : memref<2x8x32xf32, #tpu.memory_space<vmem>>, vector<1x8x32xf32>
    %221 = vector.shape_cast %220 : vector<1x8x32xf32> to vector<8x32xf32>
    %222 = vector.shape_cast %215 : vector<8x32xf32> to vector<1x8x32xf32>
    tpu.vector_store %arg17[%c1_147, %c0_148, %c0_149], %222 {strides = array<i32>} : memref<2x8x32xf32, #tpu.memory_space<vmem>>, vector<1x8x32xf32>,
    %c0_150 = arith.constant 0 : index
    %c0_151 = arith.constant 0 : index
    %c0_152 = arith.constant 0 : index
    %223 = vector.load %arg18[%c0_150, %c0_151, %c0_152] : memref<2x8x32xf32, #tpu.memory_space<vmem>>, vector<1x8x32xf32>
    %224 = vector.shape_cast %223 : vector<1x8x32xf32> to vector<8x32xf32>
    %225 = vector.shape_cast %190 : vector<8x32xf32> to vector<1x8x32xf32>
    tpu.vector_store %arg18[%c0_150, %c0_151, %c0_152], %225 {strides = array<i32>} : memref<2x8x32xf32, #tpu.memory_space<vmem>>, vector<1x8x32xf32>,
    %c1_153 = arith.constant 1 : index
    %c0_154 = arith.constant 0 : index
    %c0_155 = arith.constant 0 : index
    %226 = vector.load %arg18[%c1_153, %c0_154, %c0_155] : memref<2x8x32xf32, #tpu.memory_space<vmem>>, vector<1x8x32xf32>
    %227 = vector.shape_cast %226 : vector<1x8x32xf32> to vector<8x32xf32>
    %228 = vector.shape_cast %213 : vector<8x32xf32> to vector<1x8x32xf32>
    tpu.vector_store %arg18[%c1_153, %c0_154, %c0_155], %228 {strides = array<i32>} : memref<2x8x32xf32, #tpu.memory_space<vmem>>, vector<1x8x32xf32>,
    %c0_156 = arith.constant 0 : index
    %c0_157 = arith.constant 0 : index
    %c0_158 = arith.constant 0 : index
    %229 = vector.load %arg17[%c0_156, %c0_157, %c0_158] : memref<2x8x32xf32, #tpu.memory_space<vmem>>, vector<1x8x32xf32>
    %230 = vector.shape_cast %229 : vector<1x8x32xf32> to vector<8x32xf32>
    %c1_159 = arith.constant 1 : index
    %c0_160 = arith.constant 0 : index
    %c0_161 = arith.constant 0 : index
    %231 = vector.load %arg17[%c1_159, %c0_160, %c0_161] : memref<2x8x32xf32, #tpu.memory_space<vmem>>, vector<1x8x32xf32>
    %232 = vector.shape_cast %231 : vector<1x8x32xf32> to vector<8x32xf32>
    %c0_162 = arith.constant 0 : index
    %c0_163 = arith.constant 0 : index
    %c0_164 = arith.constant 0 : index
    %233 = vector.load %arg18[%c0_162, %c0_163, %c0_164] : memref<2x8x32xf32, #tpu.memory_space<vmem>>, vector<1x8x32xf32>
    %234 = vector.shape_cast %233 : vector<1x8x32xf32> to vector<8x32xf32>
    %c1_165 = arith.constant 1 : index
    %c0_166 = arith.constant 0 : index
    %c0_167 = arith.constant 0 : index
    %235 = vector.load %arg18[%c1_165, %c0_166, %c0_167] : memref<2x8x32xf32, #tpu.memory_space<vmem>>, vector<1x8x32xf32>
    %236 = vector.shape_cast %235 : vector<1x8x32xf32> to vector<8x32xf32>
    %c32 = arith.constant 32 : index
    %c0_168 = arith.constant 0 : index
    %237 = vector.load %arg16[%c32, %c0_168] : memref<64x128xf32, #tpu.memory_space<vmem>>, vector<8x128xf32>
    %c0_169 = arith.constant 0 : index
    %c0_170 = arith.constant 0 : index
    %238 = vector.load %arg5[%c0_169, %c0_170] : memref<32x128xf32, #tpu.memory_space<vmem>>, vector<32x128xf32>
    %cst_171 = arith.constant dense<0.000000e+00> : vector<8x128xf32>
    %239 = tpu.matmul %230, %238, %cst_171 {dimension_numbers = #tpu.dot_dimension_numbers<[1], [0], [0], [1], [0, 0, 1, 1], [], []>} : vector<8x32xf32>, vector<32x128xf32>, vector<8x128xf32> -> vector<8x128xf32>
    %240 = arith.addf %237, %239 : vector<8x128xf32>
    %241 = arith.negf %240 : vector<8x128xf32>
    %242 = math.exp %241 : vector<8x128xf32>
    %cst_172 = arith.constant 1.000000e+00 : f32
    %243 = vector.broadcast %cst_172 : f32 to vector<8x128xf32>
    %244 = arith.addf %243, %242 : vector<8x128xf32>
    %245 = arith.divf %243, %244 : vector<8x128xf32>
    %246 = vector.extract_strided_slice %245 {offsets = [0, 0], sizes = [8, 32], strides = [1, 1]} : vector<8x128xf32> to vector<8x32xf32>
    %247 = vector.extract_strided_slice %245 {offsets = [0, 32], sizes = [8, 32], strides = [1, 1]} : vector<8x128xf32> to vector<8x32xf32>
    %248 = vector.extract_strided_slice %245 {offsets = [0, 96], sizes = [8, 32], strides = [1, 1]} : vector<8x128xf32> to vector<8x32xf32>
    %249 = vector.extract_strided_slice %240 {offsets = [0, 64], sizes = [8, 32], strides = [1, 1]} : vector<8x128xf32> to vector<8x32xf32>
    %250 = math.tanh %249 : vector<8x32xf32>
    %251 = arith.mulf %247, %234 : vector<8x32xf32>
    %252 = arith.mulf %246, %250 : vector<8x32xf32>
    %253 = arith.addf %251, %252 : vector<8x32xf32>
    %254 = math.tanh %253 : vector<8x32xf32>
    %255 = arith.mulf %248, %254 : vector<8x32xf32>
    %c0_173 = arith.constant 0 : index
    %c0_174 = arith.constant 0 : index
    %256 = vector.load %arg7[%c0_173, %c0_174] : memref<32x128xf32, #tpu.memory_space<vmem>>, vector<32x128xf32>
    %cst_175 = arith.constant dense<0.000000e+00> : vector<8x128xf32>
    %257 = tpu.matmul %230, %256, %cst_175 {dimension_numbers = #tpu.dot_dimension_numbers<[1], [0], [0], [1], [0, 0, 1, 1], [], []>} : vector<8x32xf32>, vector<32x128xf32>, vector<8x128xf32> -> vector<8x128xf32>
    %c0_176 = arith.constant 0 : index
    %c0_177 = arith.constant 0 : index
    %258 = vector.load %arg9[%c0_176, %c0_177] : memref<1x128xf32, #tpu.memory_space<vmem>>, vector<1x128xf32>
    %259 = vector.broadcast %258 : vector<1x128xf32> to vector<8x128xf32>
    %260 = arith.addf %257, %259 : vector<8x128xf32>
    %c0_178 = arith.constant 0 : index
    %c0_179 = arith.constant 0 : index
    %261 = vector.load %arg8[%c0_178, %c0_179] : memref<32x128xf32, #tpu.memory_space<vmem>>, vector<32x128xf32>
    %cst_180 = arith.constant dense<0.000000e+00> : vector<8x128xf32>
    %262 = tpu.matmul %232, %261, %cst_180 {dimension_numbers = #tpu.dot_dimension_numbers<[1], [0], [0], [1], [0, 0, 1, 1], [], []>} : vector<8x32xf32>, vector<32x128xf32>, vector<8x128xf32> -> vector<8x128xf32>
    %263 = arith.addf %260, %262 : vector<8x128xf32>
    %264 = arith.negf %263 : vector<8x128xf32>
    %265 = math.exp %264 : vector<8x128xf32>
    %cst_181 = arith.constant 1.000000e+00 : f32
    %266 = vector.broadcast %cst_181 : f32 to vector<8x128xf32>
    %267 = arith.addf %266, %265 : vector<8x128xf32>
    %268 = arith.divf %266, %267 : vector<8x128xf32>
    %269 = vector.extract_strided_slice %268 {offsets = [0, 0], sizes = [8, 32], strides = [1, 1]} : vector<8x128xf32> to vector<8x32xf32>
    %270 = vector.extract_strided_slice %268 {offsets = [0, 32], sizes = [8, 32], strides = [1, 1]} : vector<8x128xf32> to vector<8x32xf32>
    %271 = vector.extract_strided_slice %268 {offsets = [0, 96], sizes = [8, 32], strides = [1, 1]} : vector<8x128xf32> to vector<8x32xf32>
    %272 = vector.extract_strided_slice %263 {offsets = [0, 64], sizes = [8, 32], strides = [1, 1]} : vector<8x128xf32> to vector<8x32xf32>
    %273 = math.tanh %272 : vector<8x32xf32>
    %274 = arith.mulf %270, %236 : vector<8x32xf32>
    %275 = arith.mulf %269, %273 : vector<8x32xf32>
    %276 = arith.addf %274, %275 : vector<8x32xf32>
    %277 = math.tanh %276 : vector<8x32xf32>
    %278 = arith.mulf %271, %277 : vector<8x32xf32>
    %c24_182 = arith.constant 24 : index
    %c0_183 = arith.constant 0 : index
    %279 = vector.load %arg15[%c24_182, %c0_183] : memref<64x32xf32, #tpu.memory_space<vmem>>, vector<8x32xf32>
    tpu.vector_store %arg15[%c24_182, %c0_183], %278 {strides = array<i32>} : memref<64x32xf32, #tpu.memory_space<vmem>>, vector<8x32xf32>,
    %c0_184 = arith.constant 0 : index
    %c0_185 = arith.constant 0 : index
    %c0_186 = arith.constant 0 : index
    %280 = vector.load %arg17[%c0_184, %c0_185, %c0_186] : memref<2x8x32xf32, #tpu.memory_space<vmem>>, vector<1x8x32xf32>
    %281 = vector.shape_cast %280 : vector<1x8x32xf32> to vector<8x32xf32>
    %282 = vector.shape_cast %255 : vector<8x32xf32> to vector<1x8x32xf32>
    tpu.vector_store %arg17[%c0_184, %c0_185, %c0_186], %282 {strides = array<i32>} : memref<2x8x32xf32, #tpu.memory_space<vmem>>, vector<1x8x32xf32>,
    %c1_187 = arith.constant 1 : index
    %c0_188 = arith.constant 0 : index
    %c0_189 = arith.constant 0 : index
    %283 = vector.load %arg17[%c1_187, %c0_188, %c0_189] : memref<2x8x32xf32, #tpu.memory_space<vmem>>, vector<1x8x32xf32>
    %284 = vector.shape_cast %283 : vector<1x8x32xf32> to vector<8x32xf32>
    %285 = vector.shape_cast %278 : vector<8x32xf32> to vector<1x8x32xf32>
    tpu.vector_store %arg17[%c1_187, %c0_188, %c0_189], %285 {strides = array<i32>} : memref<2x8x32xf32, #tpu.memory_space<vmem>>, vector<1x8x32xf32>,
    %c0_190 = arith.constant 0 : index
    %c0_191 = arith.constant 0 : index
    %c0_192 = arith.constant 0 : index
    %286 = vector.load %arg18[%c0_190, %c0_191, %c0_192] : memref<2x8x32xf32, #tpu.memory_space<vmem>>, vector<1x8x32xf32>
    %287 = vector.shape_cast %286 : vector<1x8x32xf32> to vector<8x32xf32>
    %288 = vector.shape_cast %253 : vector<8x32xf32> to vector<1x8x32xf32>
    tpu.vector_store %arg18[%c0_190, %c0_191, %c0_192], %288 {strides = array<i32>} : memref<2x8x32xf32, #tpu.memory_space<vmem>>, vector<1x8x32xf32>,
    %c1_193 = arith.constant 1 : index
    %c0_194 = arith.constant 0 : index
    %c0_195 = arith.constant 0 : index
    %289 = vector.load %arg18[%c1_193, %c0_194, %c0_195] : memref<2x8x32xf32, #tpu.memory_space<vmem>>, vector<1x8x32xf32>
    %290 = vector.shape_cast %289 : vector<1x8x32xf32> to vector<8x32xf32>
    %291 = vector.shape_cast %276 : vector<8x32xf32> to vector<1x8x32xf32>
    tpu.vector_store %arg18[%c1_193, %c0_194, %c0_195], %291 {strides = array<i32>} : memref<2x8x32xf32, #tpu.memory_space<vmem>>, vector<1x8x32xf32>,
    %c0_196 = arith.constant 0 : index
    %c0_197 = arith.constant 0 : index
    %c0_198 = arith.constant 0 : index
    %292 = vector.load %arg17[%c0_196, %c0_197, %c0_198] : memref<2x8x32xf32, #tpu.memory_space<vmem>>, vector<1x8x32xf32>
    %293 = vector.shape_cast %292 : vector<1x8x32xf32> to vector<8x32xf32>
    %c1_199 = arith.constant 1 : index
    %c0_200 = arith.constant 0 : index
    %c0_201 = arith.constant 0 : index
    %294 = vector.load %arg17[%c1_199, %c0_200, %c0_201] : memref<2x8x32xf32, #tpu.memory_space<vmem>>, vector<1x8x32xf32>
    %295 = vector.shape_cast %294 : vector<1x8x32xf32> to vector<8x32xf32>
    %c0_202 = arith.constant 0 : index
    %c0_203 = arith.constant 0 : index
    %c0_204 = arith.constant 0 : index
    %296 = vector.load %arg18[%c0_202, %c0_203, %c0_204] : memref<2x8x32xf32, #tpu.memory_space<vmem>>, vector<1x8x32xf32>
    %297 = vector.shape_cast %296 : vector<1x8x32xf32> to vector<8x32xf32>
    %c1_205 = arith.constant 1 : index
    %c0_206 = arith.constant 0 : index
    %c0_207 = arith.constant 0 : index
    %298 = vector.load %arg18[%c1_205, %c0_206, %c0_207] : memref<2x8x32xf32, #tpu.memory_space<vmem>>, vector<1x8x32xf32>
    %299 = vector.shape_cast %298 : vector<1x8x32xf32> to vector<8x32xf32>
    %c40 = arith.constant 40 : index
    %c0_208 = arith.constant 0 : index
    %300 = vector.load %arg16[%c40, %c0_208] : memref<64x128xf32, #tpu.memory_space<vmem>>, vector<8x128xf32>
    %c0_209 = arith.constant 0 : index
    %c0_210 = arith.constant 0 : index
    %301 = vector.load %arg5[%c0_209, %c0_210] : memref<32x128xf32, #tpu.memory_space<vmem>>, vector<32x128xf32>
    %cst_211 = arith.constant dense<0.000000e+00> : vector<8x128xf32>
    %302 = tpu.matmul %293, %301, %cst_211 {dimension_numbers = #tpu.dot_dimension_numbers<[1], [0], [0], [1], [0, 0, 1, 1], [], []>} : vector<8x32xf32>, vector<32x128xf32>, vector<8x128xf32> -> vector<8x128xf32>
    %303 = arith.addf %300, %302 : vector<8x128xf32>
    %304 = arith.negf %303 : vector<8x128xf32>
    %305 = math.exp %304 : vector<8x128xf32>
    %cst_212 = arith.constant 1.000000e+00 : f32
    %306 = vector.broadcast %cst_212 : f32 to vector<8x128xf32>
    %307 = arith.addf %306, %305 : vector<8x128xf32>
    %308 = arith.divf %306, %307 : vector<8x128xf32>
    %309 = vector.extract_strided_slice %308 {offsets = [0, 0], sizes = [8, 32], strides = [1, 1]} : vector<8x128xf32> to vector<8x32xf32>
    %310 = vector.extract_strided_slice %308 {offsets = [0, 32], sizes = [8, 32], strides = [1, 1]} : vector<8x128xf32> to vector<8x32xf32>
    %311 = vector.extract_strided_slice %308 {offsets = [0, 96], sizes = [8, 32], strides = [1, 1]} : vector<8x128xf32> to vector<8x32xf32>
    %312 = vector.extract_strided_slice %303 {offsets = [0, 64], sizes = [8, 32], strides = [1, 1]} : vector<8x128xf32> to vector<8x32xf32>
    %313 = math.tanh %312 : vector<8x32xf32>
    %314 = arith.mulf %310, %297 : vector<8x32xf32>
    %315 = arith.mulf %309, %313 : vector<8x32xf32>
    %316 = arith.addf %314, %315 : vector<8x32xf32>
    %317 = math.tanh %316 : vector<8x32xf32>
    %318 = arith.mulf %311, %317 : vector<8x32xf32>
    %c0_213 = arith.constant 0 : index
    %c0_214 = arith.constant 0 : index
    %319 = vector.load %arg7[%c0_213, %c0_214] : memref<32x128xf32, #tpu.memory_space<vmem>>, vector<32x128xf32>
    %cst_215 = arith.constant dense<0.000000e+00> : vector<8x128xf32>
    %320 = tpu.matmul %293, %319, %cst_215 {dimension_numbers = #tpu.dot_dimension_numbers<[1], [0], [0], [1], [0, 0, 1, 1], [], []>} : vector<8x32xf32>, vector<32x128xf32>, vector<8x128xf32> -> vector<8x128xf32>
    %c0_216 = arith.constant 0 : index
    %c0_217 = arith.constant 0 : index
    %321 = vector.load %arg9[%c0_216, %c0_217] : memref<1x128xf32, #tpu.memory_space<vmem>>, vector<1x128xf32>
    %322 = vector.broadcast %321 : vector<1x128xf32> to vector<8x128xf32>
    %323 = arith.addf %320, %322 : vector<8x128xf32>
    %c0_218 = arith.constant 0 : index
    %c0_219 = arith.constant 0 : index
    %324 = vector.load %arg8[%c0_218, %c0_219] : memref<32x128xf32, #tpu.memory_space<vmem>>, vector<32x128xf32>
    %cst_220 = arith.constant dense<0.000000e+00> : vector<8x128xf32>
    %325 = tpu.matmul %295, %324, %cst_220 {dimension_numbers = #tpu.dot_dimension_numbers<[1], [0], [0], [1], [0, 0, 1, 1], [], []>} : vector<8x32xf32>, vector<32x128xf32>, vector<8x128xf32> -> vector<8x128xf32>
    %326 = arith.addf %323, %325 : vector<8x128xf32>
    %327 = arith.negf %326 : vector<8x128xf32>
    %328 = math.exp %327 : vector<8x128xf32>
    %cst_221 = arith.constant 1.000000e+00 : f32
    %329 = vector.broadcast %cst_221 : f32 to vector<8x128xf32>
    %330 = arith.addf %329, %328 : vector<8x128xf32>
    %331 = arith.divf %329, %330 : vector<8x128xf32>
    %332 = vector.extract_strided_slice %331 {offsets = [0, 0], sizes = [8, 32], strides = [1, 1]} : vector<8x128xf32> to vector<8x32xf32>
    %333 = vector.extract_strided_slice %331 {offsets = [0, 32], sizes = [8, 32], strides = [1, 1]} : vector<8x128xf32> to vector<8x32xf32>
    %334 = vector.extract_strided_slice %331 {offsets = [0, 96], sizes = [8, 32], strides = [1, 1]} : vector<8x128xf32> to vector<8x32xf32>
    %335 = vector.extract_strided_slice %326 {offsets = [0, 64], sizes = [8, 32], strides = [1, 1]} : vector<8x128xf32> to vector<8x32xf32>
    %336 = math.tanh %335 : vector<8x32xf32>
    %337 = arith.mulf %333, %299 : vector<8x32xf32>
    %338 = arith.mulf %332, %336 : vector<8x32xf32>
    %339 = arith.addf %337, %338 : vector<8x32xf32>
    %340 = math.tanh %339 : vector<8x32xf32>
    %341 = arith.mulf %334, %340 : vector<8x32xf32>
    %c32_222 = arith.constant 32 : index
    %c0_223 = arith.constant 0 : index
    %342 = vector.load %arg15[%c32_222, %c0_223] : memref<64x32xf32, #tpu.memory_space<vmem>>, vector<8x32xf32>
    tpu.vector_store %arg15[%c32_222, %c0_223], %341 {strides = array<i32>} : memref<64x32xf32, #tpu.memory_space<vmem>>, vector<8x32xf32>,
    %c0_224 = arith.constant 0 : index
    %c0_225 = arith.constant 0 : index
    %c0_226 = arith.constant 0 : index
    %343 = vector.load %arg17[%c0_224, %c0_225, %c0_226] : memref<2x8x32xf32, #tpu.memory_space<vmem>>, vector<1x8x32xf32>
    %344 = vector.shape_cast %343 : vector<1x8x32xf32> to vector<8x32xf32>
    %345 = vector.shape_cast %318 : vector<8x32xf32> to vector<1x8x32xf32>
    tpu.vector_store %arg17[%c0_224, %c0_225, %c0_226], %345 {strides = array<i32>} : memref<2x8x32xf32, #tpu.memory_space<vmem>>, vector<1x8x32xf32>,
    %c1_227 = arith.constant 1 : index
    %c0_228 = arith.constant 0 : index
    %c0_229 = arith.constant 0 : index
    %346 = vector.load %arg17[%c1_227, %c0_228, %c0_229] : memref<2x8x32xf32, #tpu.memory_space<vmem>>, vector<1x8x32xf32>
    %347 = vector.shape_cast %346 : vector<1x8x32xf32> to vector<8x32xf32>
    %348 = vector.shape_cast %341 : vector<8x32xf32> to vector<1x8x32xf32>
    tpu.vector_store %arg17[%c1_227, %c0_228, %c0_229], %348 {strides = array<i32>} : memref<2x8x32xf32, #tpu.memory_space<vmem>>, vector<1x8x32xf32>,
    %c0_230 = arith.constant 0 : index
    %c0_231 = arith.constant 0 : index
    %c0_232 = arith.constant 0 : index
    %349 = vector.load %arg18[%c0_230, %c0_231, %c0_232] : memref<2x8x32xf32, #tpu.memory_space<vmem>>, vector<1x8x32xf32>
    %350 = vector.shape_cast %349 : vector<1x8x32xf32> to vector<8x32xf32>
    %351 = vector.shape_cast %316 : vector<8x32xf32> to vector<1x8x32xf32>
    tpu.vector_store %arg18[%c0_230, %c0_231, %c0_232], %351 {strides = array<i32>} : memref<2x8x32xf32, #tpu.memory_space<vmem>>, vector<1x8x32xf32>,
    %c1_233 = arith.constant 1 : index
    %c0_234 = arith.constant 0 : index
    %c0_235 = arith.constant 0 : index
    %352 = vector.load %arg18[%c1_233, %c0_234, %c0_235] : memref<2x8x32xf32, #tpu.memory_space<vmem>>, vector<1x8x32xf32>
    %353 = vector.shape_cast %352 : vector<1x8x32xf32> to vector<8x32xf32>
    %354 = vector.shape_cast %339 : vector<8x32xf32> to vector<1x8x32xf32>
    tpu.vector_store %arg18[%c1_233, %c0_234, %c0_235], %354 {strides = array<i32>} : memref<2x8x32xf32, #tpu.memory_space<vmem>>, vector<1x8x32xf32>,
    %c0_236 = arith.constant 0 : index
    %c0_237 = arith.constant 0 : index
    %c0_238 = arith.constant 0 : index
    %355 = vector.load %arg17[%c0_236, %c0_237, %c0_238] : memref<2x8x32xf32, #tpu.memory_space<vmem>>, vector<1x8x32xf32>
    %356 = vector.shape_cast %355 : vector<1x8x32xf32> to vector<8x32xf32>
    %c1_239 = arith.constant 1 : index
    %c0_240 = arith.constant 0 : index
    %c0_241 = arith.constant 0 : index
    %357 = vector.load %arg17[%c1_239, %c0_240, %c0_241] : memref<2x8x32xf32, #tpu.memory_space<vmem>>, vector<1x8x32xf32>
    %358 = vector.shape_cast %357 : vector<1x8x32xf32> to vector<8x32xf32>
    %c0_242 = arith.constant 0 : index
    %c0_243 = arith.constant 0 : index
    %c0_244 = arith.constant 0 : index
    %359 = vector.load %arg18[%c0_242, %c0_243, %c0_244] : memref<2x8x32xf32, #tpu.memory_space<vmem>>, vector<1x8x32xf32>
    %360 = vector.shape_cast %359 : vector<1x8x32xf32> to vector<8x32xf32>
    %c1_245 = arith.constant 1 : index
    %c0_246 = arith.constant 0 : index
    %c0_247 = arith.constant 0 : index
    %361 = vector.load %arg18[%c1_245, %c0_246, %c0_247] : memref<2x8x32xf32, #tpu.memory_space<vmem>>, vector<1x8x32xf32>
    %362 = vector.shape_cast %361 : vector<1x8x32xf32> to vector<8x32xf32>
    %c48 = arith.constant 48 : index
    %c0_248 = arith.constant 0 : index
    %363 = vector.load %arg16[%c48, %c0_248] : memref<64x128xf32, #tpu.memory_space<vmem>>, vector<8x128xf32>
    %c0_249 = arith.constant 0 : index
    %c0_250 = arith.constant 0 : index
    %364 = vector.load %arg5[%c0_249, %c0_250] : memref<32x128xf32, #tpu.memory_space<vmem>>, vector<32x128xf32>
    %cst_251 = arith.constant dense<0.000000e+00> : vector<8x128xf32>
    %365 = tpu.matmul %356, %364, %cst_251 {dimension_numbers = #tpu.dot_dimension_numbers<[1], [0], [0], [1], [0, 0, 1, 1], [], []>} : vector<8x32xf32>, vector<32x128xf32>, vector<8x128xf32> -> vector<8x128xf32>
    %366 = arith.addf %363, %365 : vector<8x128xf32>
    %367 = arith.negf %366 : vector<8x128xf32>
    %368 = math.exp %367 : vector<8x128xf32>
    %cst_252 = arith.constant 1.000000e+00 : f32
    %369 = vector.broadcast %cst_252 : f32 to vector<8x128xf32>
    %370 = arith.addf %369, %368 : vector<8x128xf32>
    %371 = arith.divf %369, %370 : vector<8x128xf32>
    %372 = vector.extract_strided_slice %371 {offsets = [0, 0], sizes = [8, 32], strides = [1, 1]} : vector<8x128xf32> to vector<8x32xf32>
    %373 = vector.extract_strided_slice %371 {offsets = [0, 32], sizes = [8, 32], strides = [1, 1]} : vector<8x128xf32> to vector<8x32xf32>
    %374 = vector.extract_strided_slice %371 {offsets = [0, 96], sizes = [8, 32], strides = [1, 1]} : vector<8x128xf32> to vector<8x32xf32>
    %375 = vector.extract_strided_slice %366 {offsets = [0, 64], sizes = [8, 32], strides = [1, 1]} : vector<8x128xf32> to vector<8x32xf32>
    %376 = math.tanh %375 : vector<8x32xf32>
    %377 = arith.mulf %373, %360 : vector<8x32xf32>
    %378 = arith.mulf %372, %376 : vector<8x32xf32>
    %379 = arith.addf %377, %378 : vector<8x32xf32>
    %380 = math.tanh %379 : vector<8x32xf32>
    %381 = arith.mulf %374, %380 : vector<8x32xf32>
    %c0_253 = arith.constant 0 : index
    %c0_254 = arith.constant 0 : index
    %382 = vector.load %arg7[%c0_253, %c0_254] : memref<32x128xf32, #tpu.memory_space<vmem>>, vector<32x128xf32>
    %cst_255 = arith.constant dense<0.000000e+00> : vector<8x128xf32>
    %383 = tpu.matmul %356, %382, %cst_255 {dimension_numbers = #tpu.dot_dimension_numbers<[1], [0], [0], [1], [0, 0, 1, 1], [], []>} : vector<8x32xf32>, vector<32x128xf32>, vector<8x128xf32> -> vector<8x128xf32>
    %c0_256 = arith.constant 0 : index
    %c0_257 = arith.constant 0 : index
    %384 = vector.load %arg9[%c0_256, %c0_257] : memref<1x128xf32, #tpu.memory_space<vmem>>, vector<1x128xf32>
    %385 = vector.broadcast %384 : vector<1x128xf32> to vector<8x128xf32>
    %386 = arith.addf %383, %385 : vector<8x128xf32>
    %c0_258 = arith.constant 0 : index
    %c0_259 = arith.constant 0 : index
    %387 = vector.load %arg8[%c0_258, %c0_259] : memref<32x128xf32, #tpu.memory_space<vmem>>, vector<32x128xf32>
    %cst_260 = arith.constant dense<0.000000e+00> : vector<8x128xf32>
    %388 = tpu.matmul %358, %387, %cst_260 {dimension_numbers = #tpu.dot_dimension_numbers<[1], [0], [0], [1], [0, 0, 1, 1], [], []>} : vector<8x32xf32>, vector<32x128xf32>, vector<8x128xf32> -> vector<8x128xf32>
    %389 = arith.addf %386, %388 : vector<8x128xf32>
    %390 = arith.negf %389 : vector<8x128xf32>
    %391 = math.exp %390 : vector<8x128xf32>
    %cst_261 = arith.constant 1.000000e+00 : f32
    %392 = vector.broadcast %cst_261 : f32 to vector<8x128xf32>
    %393 = arith.addf %392, %391 : vector<8x128xf32>
    %394 = arith.divf %392, %393 : vector<8x128xf32>
    %395 = vector.extract_strided_slice %394 {offsets = [0, 0], sizes = [8, 32], strides = [1, 1]} : vector<8x128xf32> to vector<8x32xf32>
    %396 = vector.extract_strided_slice %394 {offsets = [0, 32], sizes = [8, 32], strides = [1, 1]} : vector<8x128xf32> to vector<8x32xf32>
    %397 = vector.extract_strided_slice %394 {offsets = [0, 96], sizes = [8, 32], strides = [1, 1]} : vector<8x128xf32> to vector<8x32xf32>
    %398 = vector.extract_strided_slice %389 {offsets = [0, 64], sizes = [8, 32], strides = [1, 1]} : vector<8x128xf32> to vector<8x32xf32>
    %399 = math.tanh %398 : vector<8x32xf32>
    %400 = arith.mulf %396, %362 : vector<8x32xf32>
    %401 = arith.mulf %395, %399 : vector<8x32xf32>
    %402 = arith.addf %400, %401 : vector<8x32xf32>
    %403 = math.tanh %402 : vector<8x32xf32>
    %404 = arith.mulf %397, %403 : vector<8x32xf32>
    %c40_262 = arith.constant 40 : index
    %c0_263 = arith.constant 0 : index
    %405 = vector.load %arg15[%c40_262, %c0_263] : memref<64x32xf32, #tpu.memory_space<vmem>>, vector<8x32xf32>
    tpu.vector_store %arg15[%c40_262, %c0_263], %404 {strides = array<i32>} : memref<64x32xf32, #tpu.memory_space<vmem>>, vector<8x32xf32>,
    %c0_264 = arith.constant 0 : index
    %c0_265 = arith.constant 0 : index
    %c0_266 = arith.constant 0 : index
    %406 = vector.load %arg17[%c0_264, %c0_265, %c0_266] : memref<2x8x32xf32, #tpu.memory_space<vmem>>, vector<1x8x32xf32>
    %407 = vector.shape_cast %406 : vector<1x8x32xf32> to vector<8x32xf32>
    %408 = vector.shape_cast %381 : vector<8x32xf32> to vector<1x8x32xf32>
    tpu.vector_store %arg17[%c0_264, %c0_265, %c0_266], %408 {strides = array<i32>} : memref<2x8x32xf32, #tpu.memory_space<vmem>>, vector<1x8x32xf32>,
    %c1_267 = arith.constant 1 : index
    %c0_268 = arith.constant 0 : index
    %c0_269 = arith.constant 0 : index
    %409 = vector.load %arg17[%c1_267, %c0_268, %c0_269] : memref<2x8x32xf32, #tpu.memory_space<vmem>>, vector<1x8x32xf32>
    %410 = vector.shape_cast %409 : vector<1x8x32xf32> to vector<8x32xf32>
    %411 = vector.shape_cast %404 : vector<8x32xf32> to vector<1x8x32xf32>
    tpu.vector_store %arg17[%c1_267, %c0_268, %c0_269], %411 {strides = array<i32>} : memref<2x8x32xf32, #tpu.memory_space<vmem>>, vector<1x8x32xf32>,
    %c0_270 = arith.constant 0 : index
    %c0_271 = arith.constant 0 : index
    %c0_272 = arith.constant 0 : index
    %412 = vector.load %arg18[%c0_270, %c0_271, %c0_272] : memref<2x8x32xf32, #tpu.memory_space<vmem>>, vector<1x8x32xf32>
    %413 = vector.shape_cast %412 : vector<1x8x32xf32> to vector<8x32xf32>
    %414 = vector.shape_cast %379 : vector<8x32xf32> to vector<1x8x32xf32>
    tpu.vector_store %arg18[%c0_270, %c0_271, %c0_272], %414 {strides = array<i32>} : memref<2x8x32xf32, #tpu.memory_space<vmem>>, vector<1x8x32xf32>,
    %c1_273 = arith.constant 1 : index
    %c0_274 = arith.constant 0 : index
    %c0_275 = arith.constant 0 : index
    %415 = vector.load %arg18[%c1_273, %c0_274, %c0_275] : memref<2x8x32xf32, #tpu.memory_space<vmem>>, vector<1x8x32xf32>
    %416 = vector.shape_cast %415 : vector<1x8x32xf32> to vector<8x32xf32>
    %417 = vector.shape_cast %402 : vector<8x32xf32> to vector<1x8x32xf32>
    tpu.vector_store %arg18[%c1_273, %c0_274, %c0_275], %417 {strides = array<i32>} : memref<2x8x32xf32, #tpu.memory_space<vmem>>, vector<1x8x32xf32>,
    %c0_276 = arith.constant 0 : index
    %c0_277 = arith.constant 0 : index
    %c0_278 = arith.constant 0 : index
    %418 = vector.load %arg17[%c0_276, %c0_277, %c0_278] : memref<2x8x32xf32, #tpu.memory_space<vmem>>, vector<1x8x32xf32>
    %419 = vector.shape_cast %418 : vector<1x8x32xf32> to vector<8x32xf32>
    %c1_279 = arith.constant 1 : index
    %c0_280 = arith.constant 0 : index
    %c0_281 = arith.constant 0 : index
    %420 = vector.load %arg17[%c1_279, %c0_280, %c0_281] : memref<2x8x32xf32, #tpu.memory_space<vmem>>, vector<1x8x32xf32>
    %421 = vector.shape_cast %420 : vector<1x8x32xf32> to vector<8x32xf32>
    %c0_282 = arith.constant 0 : index
    %c0_283 = arith.constant 0 : index
    %c0_284 = arith.constant 0 : index
    %422 = vector.load %arg18[%c0_282, %c0_283, %c0_284] : memref<2x8x32xf32, #tpu.memory_space<vmem>>, vector<1x8x32xf32>
    %423 = vector.shape_cast %422 : vector<1x8x32xf32> to vector<8x32xf32>
    %c1_285 = arith.constant 1 : index
    %c0_286 = arith.constant 0 : index
    %c0_287 = arith.constant 0 : index
    %424 = vector.load %arg18[%c1_285, %c0_286, %c0_287] : memref<2x8x32xf32, #tpu.memory_space<vmem>>, vector<1x8x32xf32>
    %425 = vector.shape_cast %424 : vector<1x8x32xf32> to vector<8x32xf32>
    %c56 = arith.constant 56 : index
    %c0_288 = arith.constant 0 : index
    %426 = vector.load %arg16[%c56, %c0_288] : memref<64x128xf32, #tpu.memory_space<vmem>>, vector<8x128xf32>
    %c0_289 = arith.constant 0 : index
    %c0_290 = arith.constant 0 : index
    %427 = vector.load %arg5[%c0_289, %c0_290] : memref<32x128xf32, #tpu.memory_space<vmem>>, vector<32x128xf32>
    %cst_291 = arith.constant dense<0.000000e+00> : vector<8x128xf32>
    %428 = tpu.matmul %419, %427, %cst_291 {dimension_numbers = #tpu.dot_dimension_numbers<[1], [0], [0], [1], [0, 0, 1, 1], [], []>} : vector<8x32xf32>, vector<32x128xf32>, vector<8x128xf32> -> vector<8x128xf32>
    %429 = arith.addf %426, %428 : vector<8x128xf32>
    %430 = arith.negf %429 : vector<8x128xf32>
    %431 = math.exp %430 : vector<8x128xf32>
    %cst_292 = arith.constant 1.000000e+00 : f32
    %432 = vector.broadcast %cst_292 : f32 to vector<8x128xf32>
    %433 = arith.addf %432, %431 : vector<8x128xf32>
    %434 = arith.divf %432, %433 : vector<8x128xf32>
    %435 = vector.extract_strided_slice %434 {offsets = [0, 0], sizes = [8, 32], strides = [1, 1]} : vector<8x128xf32> to vector<8x32xf32>
    %436 = vector.extract_strided_slice %434 {offsets = [0, 32], sizes = [8, 32], strides = [1, 1]} : vector<8x128xf32> to vector<8x32xf32>
    %437 = vector.extract_strided_slice %434 {offsets = [0, 96], sizes = [8, 32], strides = [1, 1]} : vector<8x128xf32> to vector<8x32xf32>
    %438 = vector.extract_strided_slice %429 {offsets = [0, 64], sizes = [8, 32], strides = [1, 1]} : vector<8x128xf32> to vector<8x32xf32>
    %439 = math.tanh %438 : vector<8x32xf32>
    %440 = arith.mulf %436, %423 : vector<8x32xf32>
    %441 = arith.mulf %435, %439 : vector<8x32xf32>
    %442 = arith.addf %440, %441 : vector<8x32xf32>
    %443 = math.tanh %442 : vector<8x32xf32>
    %444 = arith.mulf %437, %443 : vector<8x32xf32>
    %c0_293 = arith.constant 0 : index
    %c0_294 = arith.constant 0 : index
    %445 = vector.load %arg7[%c0_293, %c0_294] : memref<32x128xf32, #tpu.memory_space<vmem>>, vector<32x128xf32>
    %cst_295 = arith.constant dense<0.000000e+00> : vector<8x128xf32>
    %446 = tpu.matmul %419, %445, %cst_295 {dimension_numbers = #tpu.dot_dimension_numbers<[1], [0], [0], [1], [0, 0, 1, 1], [], []>} : vector<8x32xf32>, vector<32x128xf32>, vector<8x128xf32> -> vector<8x128xf32>
    %c0_296 = arith.constant 0 : index
    %c0_297 = arith.constant 0 : index
    %447 = vector.load %arg9[%c0_296, %c0_297] : memref<1x128xf32, #tpu.memory_space<vmem>>, vector<1x128xf32>
    %448 = vector.broadcast %447 : vector<1x128xf32> to vector<8x128xf32>
    %449 = arith.addf %446, %448 : vector<8x128xf32>
    %c0_298 = arith.constant 0 : index
    %c0_299 = arith.constant 0 : index
    %450 = vector.load %arg8[%c0_298, %c0_299] : memref<32x128xf32, #tpu.memory_space<vmem>>, vector<32x128xf32>
    %cst_300 = arith.constant dense<0.000000e+00> : vector<8x128xf32>
    %451 = tpu.matmul %421, %450, %cst_300 {dimension_numbers = #tpu.dot_dimension_numbers<[1], [0], [0], [1], [0, 0, 1, 1], [], []>} : vector<8x32xf32>, vector<32x128xf32>, vector<8x128xf32> -> vector<8x128xf32>
    %452 = arith.addf %449, %451 : vector<8x128xf32>
    %453 = arith.negf %452 : vector<8x128xf32>
    %454 = math.exp %453 : vector<8x128xf32>
    %cst_301 = arith.constant 1.000000e+00 : f32
    %455 = vector.broadcast %cst_301 : f32 to vector<8x128xf32>
    %456 = arith.addf %455, %454 : vector<8x128xf32>
    %457 = arith.divf %455, %456 : vector<8x128xf32>
    %458 = vector.extract_strided_slice %457 {offsets = [0, 0], sizes = [8, 32], strides = [1, 1]} : vector<8x128xf32> to vector<8x32xf32>
    %459 = vector.extract_strided_slice %457 {offsets = [0, 32], sizes = [8, 32], strides = [1, 1]} : vector<8x128xf32> to vector<8x32xf32>
    %460 = vector.extract_strided_slice %457 {offsets = [0, 96], sizes = [8, 32], strides = [1, 1]} : vector<8x128xf32> to vector<8x32xf32>
    %461 = vector.extract_strided_slice %452 {offsets = [0, 64], sizes = [8, 32], strides = [1, 1]} : vector<8x128xf32> to vector<8x32xf32>
    %462 = math.tanh %461 : vector<8x32xf32>
    %463 = arith.mulf %459, %425 : vector<8x32xf32>
    %464 = arith.mulf %458, %462 : vector<8x32xf32>
    %465 = arith.addf %463, %464 : vector<8x32xf32>
    %466 = math.tanh %465 : vector<8x32xf32>
    %467 = arith.mulf %460, %466 : vector<8x32xf32>
    %c48_302 = arith.constant 48 : index
    %c0_303 = arith.constant 0 : index
    %468 = vector.load %arg15[%c48_302, %c0_303] : memref<64x32xf32, #tpu.memory_space<vmem>>, vector<8x32xf32>
    tpu.vector_store %arg15[%c48_302, %c0_303], %467 {strides = array<i32>} : memref<64x32xf32, #tpu.memory_space<vmem>>, vector<8x32xf32>,
    %c0_304 = arith.constant 0 : index
    %c0_305 = arith.constant 0 : index
    %c0_306 = arith.constant 0 : index
    %469 = vector.load %arg17[%c0_304, %c0_305, %c0_306] : memref<2x8x32xf32, #tpu.memory_space<vmem>>, vector<1x8x32xf32>
    %470 = vector.shape_cast %469 : vector<1x8x32xf32> to vector<8x32xf32>
    %471 = vector.shape_cast %444 : vector<8x32xf32> to vector<1x8x32xf32>
    tpu.vector_store %arg17[%c0_304, %c0_305, %c0_306], %471 {strides = array<i32>} : memref<2x8x32xf32, #tpu.memory_space<vmem>>, vector<1x8x32xf32>,
    %c1_307 = arith.constant 1 : index
    %c0_308 = arith.constant 0 : index
    %c0_309 = arith.constant 0 : index
    %472 = vector.load %arg17[%c1_307, %c0_308, %c0_309] : memref<2x8x32xf32, #tpu.memory_space<vmem>>, vector<1x8x32xf32>
    %473 = vector.shape_cast %472 : vector<1x8x32xf32> to vector<8x32xf32>
    %474 = vector.shape_cast %467 : vector<8x32xf32> to vector<1x8x32xf32>
    tpu.vector_store %arg17[%c1_307, %c0_308, %c0_309], %474 {strides = array<i32>} : memref<2x8x32xf32, #tpu.memory_space<vmem>>, vector<1x8x32xf32>,
    %c0_310 = arith.constant 0 : index
    %c0_311 = arith.constant 0 : index
    %c0_312 = arith.constant 0 : index
    %475 = vector.load %arg18[%c0_310, %c0_311, %c0_312] : memref<2x8x32xf32, #tpu.memory_space<vmem>>, vector<1x8x32xf32>
    %476 = vector.shape_cast %475 : vector<1x8x32xf32> to vector<8x32xf32>
    %477 = vector.shape_cast %442 : vector<8x32xf32> to vector<1x8x32xf32>
    tpu.vector_store %arg18[%c0_310, %c0_311, %c0_312], %477 {strides = array<i32>} : memref<2x8x32xf32, #tpu.memory_space<vmem>>, vector<1x8x32xf32>,
    %c1_313 = arith.constant 1 : index
    %c0_314 = arith.constant 0 : index
    %c0_315 = arith.constant 0 : index
    %478 = vector.load %arg18[%c1_313, %c0_314, %c0_315] : memref<2x8x32xf32, #tpu.memory_space<vmem>>, vector<1x8x32xf32>
    %479 = vector.shape_cast %478 : vector<1x8x32xf32> to vector<8x32xf32>
    %480 = vector.shape_cast %465 : vector<8x32xf32> to vector<1x8x32xf32>
    tpu.vector_store %arg18[%c1_313, %c0_314, %c0_315], %480 {strides = array<i32>} : memref<2x8x32xf32, #tpu.memory_space<vmem>>, vector<1x8x32xf32>,
    %c0_316 = arith.constant 0 : index
    %c0_317 = arith.constant 0 : index
    %c0_318 = arith.constant 0 : index
    %481 = vector.load %arg17[%c0_316, %c0_317, %c0_318] : memref<2x8x32xf32, #tpu.memory_space<vmem>>, vector<1x8x32xf32>
    %482 = vector.shape_cast %481 : vector<1x8x32xf32> to vector<8x32xf32>
    %c1_319 = arith.constant 1 : index
    %c0_320 = arith.constant 0 : index
    %c0_321 = arith.constant 0 : index
    %483 = vector.load %arg17[%c1_319, %c0_320, %c0_321] : memref<2x8x32xf32, #tpu.memory_space<vmem>>, vector<1x8x32xf32>
    %484 = vector.shape_cast %483 : vector<1x8x32xf32> to vector<8x32xf32>
    %c1_322 = arith.constant 1 : index
    %c0_323 = arith.constant 0 : index
    %c0_324 = arith.constant 0 : index
    %485 = vector.load %arg18[%c1_322, %c0_323, %c0_324] : memref<2x8x32xf32, #tpu.memory_space<vmem>>, vector<1x8x32xf32>
    %486 = vector.shape_cast %485 : vector<1x8x32xf32> to vector<8x32xf32>
    %c0_325 = arith.constant 0 : index
    %c0_326 = arith.constant 0 : index
    %487 = vector.load %arg7[%c0_325, %c0_326] : memref<32x128xf32, #tpu.memory_space<vmem>>, vector<32x128xf32>
    %cst_327 = arith.constant dense<0.000000e+00> : vector<8x128xf32>
    %488 = tpu.matmul %482, %487, %cst_327 {dimension_numbers = #tpu.dot_dimension_numbers<[1], [0], [0], [1], [0, 0, 1, 1], [], []>} : vector<8x32xf32>, vector<32x128xf32>, vector<8x128xf32> -> vector<8x128xf32>
    %c0_328 = arith.constant 0 : index
    %c0_329 = arith.constant 0 : index
    %489 = vector.load %arg9[%c0_328, %c0_329] : memref<1x128xf32, #tpu.memory_space<vmem>>, vector<1x128xf32>
    %490 = vector.broadcast %489 : vector<1x128xf32> to vector<8x128xf32>
    %491 = arith.addf %488, %490 : vector<8x128xf32>
    %c0_330 = arith.constant 0 : index
    %c0_331 = arith.constant 0 : index
    %492 = vector.load %arg8[%c0_330, %c0_331] : memref<32x128xf32, #tpu.memory_space<vmem>>, vector<32x128xf32>
    %cst_332 = arith.constant dense<0.000000e+00> : vector<8x128xf32>
    %493 = tpu.matmul %484, %492, %cst_332 {dimension_numbers = #tpu.dot_dimension_numbers<[1], [0], [0], [1], [0, 0, 1, 1], [], []>} : vector<8x32xf32>, vector<32x128xf32>, vector<8x128xf32> -> vector<8x128xf32>
    %494 = arith.addf %491, %493 : vector<8x128xf32>
    %495 = arith.negf %494 : vector<8x128xf32>
    %496 = math.exp %495 : vector<8x128xf32>
    %cst_333 = arith.constant 1.000000e+00 : f32
    %497 = vector.broadcast %cst_333 : f32 to vector<8x128xf32>
    %498 = arith.addf %497, %496 : vector<8x128xf32>
    %499 = arith.divf %497, %498 : vector<8x128xf32>
    %500 = vector.extract_strided_slice %499 {offsets = [0, 0], sizes = [8, 32], strides = [1, 1]} : vector<8x128xf32> to vector<8x32xf32>
    %501 = vector.extract_strided_slice %499 {offsets = [0, 32], sizes = [8, 32], strides = [1, 1]} : vector<8x128xf32> to vector<8x32xf32>
    %502 = vector.extract_strided_slice %499 {offsets = [0, 96], sizes = [8, 32], strides = [1, 1]} : vector<8x128xf32> to vector<8x32xf32>
    %503 = vector.extract_strided_slice %494 {offsets = [0, 64], sizes = [8, 32], strides = [1, 1]} : vector<8x128xf32> to vector<8x32xf32>
    %504 = math.tanh %503 : vector<8x32xf32>
    %505 = arith.mulf %501, %486 : vector<8x32xf32>
    %506 = arith.mulf %500, %504 : vector<8x32xf32>
    %507 = arith.addf %505, %506 : vector<8x32xf32>
    %508 = math.tanh %507 : vector<8x32xf32>
    %509 = arith.mulf %502, %508 : vector<8x32xf32>
    %c56_334 = arith.constant 56 : index
    %c0_335 = arith.constant 0 : index
    %510 = vector.load %arg15[%c56_334, %c0_335] : memref<64x32xf32, #tpu.memory_space<vmem>>, vector<8x32xf32>
    tpu.vector_store %arg15[%c56_334, %c0_335], %509 {strides = array<i32>} : memref<64x32xf32, #tpu.memory_space<vmem>>, vector<8x32xf32>,
    %c1_336 = arith.constant 1 : index
    %c0_337 = arith.constant 0 : index
    %c0_338 = arith.constant 0 : index
    %511 = vector.load %arg17[%c1_336, %c0_337, %c0_338] : memref<2x8x32xf32, #tpu.memory_space<vmem>>, vector<1x8x32xf32>
    %512 = vector.shape_cast %511 : vector<1x8x32xf32> to vector<8x32xf32>
    %513 = vector.shape_cast %509 : vector<8x32xf32> to vector<1x8x32xf32>
    tpu.vector_store %arg17[%c1_336, %c0_337, %c0_338], %513 {strides = array<i32>} : memref<2x8x32xf32, #tpu.memory_space<vmem>>, vector<1x8x32xf32>,
    %c1_339 = arith.constant 1 : index
    %c0_340 = arith.constant 0 : index
    %c0_341 = arith.constant 0 : index
    %514 = vector.load %arg18[%c1_339, %c0_340, %c0_341] : memref<2x8x32xf32, #tpu.memory_space<vmem>>, vector<1x8x32xf32>
    %515 = vector.shape_cast %514 : vector<1x8x32xf32> to vector<8x32xf32>
    %516 = vector.shape_cast %507 : vector<8x32xf32> to vector<1x8x32xf32>
    tpu.vector_store %arg18[%c1_339, %c0_340, %c0_341], %516 {strides = array<i32>} : memref<2x8x32xf32, #tpu.memory_space<vmem>>, vector<1x8x32xf32>,
    %c0_342 = arith.constant 0 : index
    %c0_343 = arith.constant 0 : index
    %c0_344 = arith.constant 0 : index
    %517 = vector.load %arg17[%c0_342, %c0_343, %c0_344] : memref<2x8x32xf32, #tpu.memory_space<vmem>>, vector<2x8x32xf32>
    %c0_345 = arith.constant 0 : index
    %c0_346 = arith.constant 0 : index
    %c0_347 = arith.constant 0 : index
    %518 = vector.load %arg13[%c0_345, %c0_346, %c0_347] : memref<2x8x32xf32, #tpu.memory_space<vmem>>, vector<2x8x32xf32>
    tpu.vector_store %arg13[%c0_345, %c0_346, %c0_347], %517 {strides = array<i32>} : memref<2x8x32xf32, #tpu.memory_space<vmem>>, vector<2x8x32xf32>,
    %c0_348 = arith.constant 0 : index
    %c0_349 = arith.constant 0 : index
    %c0_350 = arith.constant 0 : index
    %519 = vector.load %arg18[%c0_348, %c0_349, %c0_350] : memref<2x8x32xf32, #tpu.memory_space<vmem>>, vector<2x8x32xf32>
    %c0_351 = arith.constant 0 : index
    %c0_352 = arith.constant 0 : index
    %c0_353 = arith.constant 0 : index
    %520 = vector.load %arg14[%c0_351, %c0_352, %c0_353] : memref<2x8x32xf32, #tpu.memory_space<vmem>>, vector<2x8x32xf32>
    tpu.vector_store %arg14[%c0_351, %c0_352, %c0_353], %519 {strides = array<i32>} : memref<2x8x32xf32, #tpu.memory_space<vmem>>, vector<2x8x32xf32>,
    %c0_354 = arith.constant 0 : index
    %c0_355 = arith.constant 0 : index
    %521 = vector.load %arg15[%c0_354, %c0_355] : memref<64x32xf32, #tpu.memory_space<vmem>>, vector<64x32xf32>
    %c0_356 = arith.constant 0 : index
    %c0_357 = arith.constant 0 : index
    %522 = vector.load %arg10[%c0_356, %c0_357] : memref<32x128xf32, #tpu.memory_space<vmem>>, vector<32x128xf32>
    %cst_358 = arith.constant dense<0.000000e+00> : vector<64x128xf32>
    %523 = tpu.matmul %521, %522, %cst_358 {dimension_numbers = #tpu.dot_dimension_numbers<[1], [0], [0], [1], [0, 0, 1, 1], [], []>} : vector<64x32xf32>, vector<32x128xf32>, vector<64x128xf32> -> vector<64x128xf32>
    %c0_359 = arith.constant 0 : index
    %c0_360 = arith.constant 0 : index
    %524 = vector.load %arg11[%c0_359, %c0_360] : memref<1x128xf32, #tpu.memory_space<vmem>>, vector<1x128xf32>
    %525 = vector.broadcast %524 : vector<1x128xf32> to vector<64x128xf32>
    %526 = arith.addf %523, %525 : vector<64x128xf32>
    %c0_361 = arith.constant 0 : index
    %c0_362 = arith.constant 0 : index
    %527 = vector.load %arg12[%c0_361, %c0_362] : memref<64x128xf32, #tpu.memory_space<vmem>>, vector<64x128xf32>
    tpu.vector_store %arg12[%c0_361, %c0_362], %526 {strides = array<i32>} : memref<64x128xf32, #tpu.memory_space<vmem>>, vector<64x128xf32>,
    return
  }
  func.func @transform_0(%arg0: i32) -> (i32, i32) {
    %c0_i32 = arith.constant 0 : i32
    %c0_i32_0 = arith.constant 0 : i32
    %c0_i32_1 = arith.constant 0 : i32
    return %c0_i32, %c0_i32_0 : i32, i32
  }
  func.func @transform_1(%arg0: i32) -> (i32, i32, i32) {
    %c0_i32 = arith.constant 0 : i32
    %c0_i32_0 = arith.constant 0 : i32
    %c0_i32_1 = arith.constant 0 : i32
    %c0_i32_2 = arith.constant 0 : i32
    return %c0_i32, %c0_i32_0, %c0_i32_1 : i32, i32, i32
  }
  func.func @transform_2(%arg0: i32) -> (i32, i32, i32) {
    %c0_i32 = arith.constant 0 : i32
    %c0_i32_0 = arith.constant 0 : i32
    %c0_i32_1 = arith.constant 0 : i32
    %c0_i32_2 = arith.constant 0 : i32
    return %c0_i32, %c0_i32_0, %c0_i32_1 : i32, i32, i32
  }
  func.func @transform_3(%arg0: i32) -> (i32, i32) {
    %c0_i32 = arith.constant 0 : i32
    %c0_i32_0 = arith.constant 0 : i32
    %c0_i32_1 = arith.constant 0 : i32
    return %c0_i32, %c0_i32_0 : i32, i32
  }
  func.func @transform_4(%arg0: i32) -> (i32, i32) {
    %c0_i32 = arith.constant 0 : i32
    %c0_i32_0 = arith.constant 0 : i32
    %c0_i32_1 = arith.constant 0 : i32
    return %c0_i32, %c0_i32_0 : i32, i32
  }
  func.func @transform_5(%arg0: i32) -> (i32, i32) {
    %c0_i32 = arith.constant 0 : i32
    %c0_i32_0 = arith.constant 0 : i32
    %c0_i32_1 = arith.constant 0 : i32
    return %c0_i32, %c0_i32_0 : i32, i32
  }
  func.func @transform_6(%arg0: i32) -> (i32, i32) {
    %c0_i32 = arith.constant 0 : i32
    %c0_i32_0 = arith.constant 0 : i32
    %c0_i32_1 = arith.constant 0 : i32
    return %c0_i32, %c0_i32_0 : i32, i32
  }
  func.func @transform_7(%arg0: i32) -> (i32, i32) {
    %c0_i32 = arith.constant 0 : i32
    %c0_i32_0 = arith.constant 0 : i32
    %c0_i32_1 = arith.constant 0 : i32
    return %c0_i32, %c0_i32_0 : i32, i32
  }
  func.func @transform_8(%arg0: i32) -> (i32, i32) {
    %c0_i32 = arith.constant 0 : i32
    %c0_i32_0 = arith.constant 0 : i32
    %c0_i32_1 = arith.constant 0 : i32
    return %c0_i32, %c0_i32_0 : i32, i32
  }
  func.func @transform_9(%arg0: i32) -> (i32, i32) {
    %c0_i32 = arith.constant 0 : i32
    %c0_i32_0 = arith.constant 0 : i32
    %c0_i32_1 = arith.constant 0 : i32
    return %c0_i32, %c0_i32_0 : i32, i32
  }
  func.func @transform_10(%arg0: i32) -> (i32, i32) {
    %c0_i32 = arith.constant 0 : i32
    %c0_i32_0 = arith.constant 0 : i32
    %c0_i32_1 = arith.constant 0 : i32
    return %c0_i32, %c0_i32_0 : i32, i32
  }
  func.func @transform_11(%arg0: i32) -> (i32, i32) {
    %c0_i32 = arith.constant 0 : i32
    %c0_i32_0 = arith.constant 0 : i32
    %c0_i32_1 = arith.constant 0 : i32
    return %c0_i32, %c0_i32_0 : i32, i32
  }
  func.func @transform_12(%arg0: i32) -> (i32, i32, i32) {
    %c0_i32 = arith.constant 0 : i32
    %c0_i32_0 = arith.constant 0 : i32
    %c0_i32_1 = arith.constant 0 : i32
    %c0_i32_2 = arith.constant 0 : i32
    return %c0_i32, %c0_i32_0, %c0_i32_1 : i32, i32, i32
  }
  func.func @transform_13(%arg0: i32) -> (i32, i32, i32) {
    %c0_i32 = arith.constant 0 : i32
    %c0_i32_0 = arith.constant 0 : i32
    %c0_i32_1 = arith.constant 0 : i32
    %c0_i32_2 = arith.constant 0 : i32
    return %c0_i32, %c0_i32_0, %c0_i32_1 : i32, i32, i32
  }
}

</mosaic_0001>

<bundles_post_ra>
// kernel: sherlock_forward.1
= control target key start
LH: loop header
LB: loop body
LE: loop exit
PB: predicated region body
PF: predicated region fallthrough
CT: control target
= control target key end

     0   :  { %vm60_vm0 = vcmask 261120   ;;  %v3777_v14 = vmov 0.0|0.0   ;;  %vm3778_vm1 = vmmov 0   ;;  %v3779_v20 = vmov 0.0   ;;  %s3780_s23 = smov 64   ;;  %s3781_s24 = smov 32   ;;  %s4427_s3 = inlined_call_operand.vmem [shape: f32[32,128], index: 3, kind: input, shape index: {}]   ;;  %s4428_s0 = inlined_call_operand.vmem [shape: f32[64,32], index: 0, kind: input, shape index: {}]   ;;  %s4429_s1 = inlined_call_operand.vmem [shape: f32[2,8,32], index: 1, kind: input, shape index: {}]   ;;  %s4430_s4 = inlined_call_operand.vmem [shape: f32[32,128], index: 4, kind: input, shape index: {}]   ;;  %s4431_s2 = inlined_call_operand.vmem [shape: f32[2,8,32], index: 2, kind: input, shape index: {}]   ;;  %s4432_s5 = inlined_call_operand.vmem [shape: f32[1,128], index: 5, kind: input, shape index: {}]   ;;  %s4433_s6 = inlined_call_operand.vmem [shape: f32[32,128], index: 6, kind: input, shape index: {}]   ;;  %s4434_s7 = inlined_call_operand.vmem [shape: f32[32,128], index: 7, kind: input, shape index: {}]   ;;  %s4435_s8 = inlined_call_operand.vmem [shape: f32[1,128], index: 8, kind: input, shape index: {}]   ;;  %s4436_s9 = inlined_call_operand.vmem [shape: f32[32,128], index: 9, kind: input, shape index: {}]   ;;  %s4437_s10 = inlined_call_operand.vmem [shape: f32[1,128], index: 10, kind: input, shape index: {}]   ;;  %s4438_s11 = inlined_call_operand.vmem [shape: f32[64,128], index: 11, kind: output, shape index: {0}]   ;;  %s4439_s12 = inlined_call_operand.vmem [shape: f32[2,8,32], index: 12, kind: output, shape index: {1}]   ;;  %s4440_s13 = inlined_call_operand.vmem [shape: f32[2,8,32], index: 13, kind: output, shape index: {2}]  }
   0x1   :  { %v49_v0 = vld [vmem:[%s4427_s3] sm:$0xff]  ;;  %v50_v1 = vld [vmem:[%s4427_s3 + $0x8] sm:$0xff]  ;;  %v51_v2 = vld [vmem:[%s4427_s3 + $0x10] sm:$0xff]  ;;  %s3782_s25 = smov 96  }
   0x2   :  { %v3454_v3 = vpack.c.bf16 %v50_v1, %v49_v0  ;;  %v52_v4 = vld [vmem:[%s4427_s3 + $0x18] sm:$0xff]  ;;  %v45_v5 = vld [vmem:[%s4428_s0 + $0x20] sm:$0xff]  ;;  %v210_v10 = vld [vmem:[%s4430_s4 + $0x8] sm:$0xff] }
   0x3   :  { %v3458_v6 = vpack.c.bf16 %v52_v4, %v51_v2  ;;  %3164 = vmatprep.mubr.msk.f32.mxu1 %vm60_vm0, %v45_v5  ;;  %v41_v7 = vld [vmem:[%s4428_s0] sm:$0xff]  ;;  %v46_v11 = vld [vmem:[%s4428_s0 + $0x28] sm:$0xff]  ;;  %v47_v15 = vld [vmem:[%s4428_s0 + $0x30] sm:$0xff] }
   0x4   :  { %3614 = vmatprep.subr.bf16.mxu1 %v3454_v3  ;;  %3455 = vmatprep.subr.bf16.mxu0 %v3454_v3  ;;  %v198_v8 = vld [vmem:[%s4429_s1] sm:$0xff]  ;;  %v42_v13 = vld [vmem:[%s4428_s0 + $0x8] sm:$0xff]  ;;  %v211_v16 = vld [vmem:[%s4430_s4 + $0x10] sm:$0xff] }
   0x5   :  { %3616 = vmatpush3.bf16.msra.mxu1 %v3454_v3  ;;  %3457 = vmatpush3.bf16.msra.mxu0 %v3454_v3  ;;  %v209_v9 = vld [vmem:[%s4430_s4] sm:$0xff]  ;;  %200 = vst.msk [vmem:[#allocation4] sm:$0xff] %vm60_vm0, %v198_v8  ;;  %v212_v17 = vld [vmem:[%s4430_s4 + $0x18] sm:$0xff]  ;;  %v439_v48 = vld [vmem:[%s4433_s6 + $0x8] sm:$0xff] }
   0x6   :  { %3615 = vmatprep.subr.bf16.mxu1 %v3458_v6  ;;  %3459 = vmatprep.subr.bf16.mxu0 %v3458_v6  ;;  %v3886_v12 = vpack.c.bf16 %v210_v10, %v209_v9  ;;  %v48_v18 = vld [vmem:[%s4428_s0 + $0x38] sm:$0xff]  ;;  %v3909_v19 = vpack.c.bf16 %v212_v17, %v211_v16  ;;  %v202_v22 = vld [vmem:[%s4431_s2] sm:$0xff]  ;;  %v43_v50 = vld [vmem:[%s4428_s0 + $0x10] sm:$0xff] }
   0x7   :  { %3158 = vmatprep.mubr.msk.f32.mxu0 %vm60_vm0, %v41_v7  ;;  %204 = vst.msk [vmem:[#allocation5] sm:$0xff] %vm60_vm0, %v202_v22  ;;  %v3937_v27 = vld [vmem:[%s4432_s5] ss:$0 sm:$0xff]  ;;  %v44_v51 = vld [vmem:[%s4428_s0 + $0x18] sm:$0xff]  ;;  %v440_v52 = vld [vmem:[%s4433_s6 + $0x10] sm:$0xff] }
   0x8   :  { %v438_v47 = vld [vmem:[%s4433_s6] sm:$0xff]  ;;  %v441_v53 = vld [vmem:[%s4433_s6 + $0x18] sm:$0xff]  ;;  %v199_v55 = vld [vmem:[%s4429_s1 + $0x8] sm:$0xff] }
   0x9   :  { %3617 = vmatpush3.bf16.msra.mxu1 %v3458_v6  ;;  %3461 = vmatpush3.bf16.msra.mxu0 %v3458_v6  ;;  %v3955_v49 = vpack.c.bf16 %v439_v48, %v438_v47  ;;  %v3973_v54 = vpack.c.bf16 %v441_v53, %v440_v52  ;;  %201 = vst.msk [vmem:[#allocation4 + $0x8] sm:$0xff] %vm60_vm0, %v199_v55  ;;  %v519_v60 = vld [vmem:[%s4434_s7] sm:$0xff]  ;;  %v520_v61 = vld [vmem:[%s4434_s7 + $0x8] sm:$0xff]  ;;  %v521_v63 = vld [vmem:[%s4434_s7 + $0x10] sm:$0xff] }
   0xa   :  { %3462 = vmatprep.subr.bf16.mxu1 %v3777_v14  ;;  %3474 = vmatprep.subr.bf16.mxu0 %v3777_v14  ;;  %v3992_v62 = vpack.c.bf16 %v520_v61, %v519_v60  ;;  %v522_v0 = vld [vmem:[%s4434_s7 + $0x18] sm:$0xff]  ;;  %v203_v6 = vld [vmem:[%s4431_s2 + $0x8] sm:$0xff] }
   0xb   :  { %v4003_v2 = vpack.c.bf16 %v522_v0, %v521_v63  ;;  %205 = vst.msk [vmem:[#allocation5 + $0x8] sm:$0xff] %vm60_vm0, %v203_v6 }
   0xc   :  { %3165 = vmatmul.mubr.msk.f32.vlgmr.msra.gmra.mrb[0].mxu1 %vm60_vm0, %v46_v11  ;;  %3159 = vmatmul.mubr.msk.f32.vlgmr.msra.gmra.mrb[0].mxu0 %vm60_vm0, %v42_v13  ;;  %v206_v21 = vld [vmem:[#allocation4] sm:$0xff] }
   0xd   :  { %3464 = vmatpush3.bf16.msra.mxu1 %v3886_v12  ;;  %3167 = vmatprep.mubr.msk.f32.mxu1 %vm60_vm0, %v47_v15  ;;  %v4036_v11 = vld [vmem:[%s4435_s8] ss:$0 sm:$0xff] }
   0xe   :  { %3465 = vmatprep.subr.bf16.mxu1 %v3777_v14  ;;  %v207_v35 = vld [vmem:[#allocation5] sm:$0xff]  ;;  %3476 = vmatpush3.bf16.msra.mxu0 %v3955_v49 }
   0xf   :  { %3161 = vmatprep.mubr.msk.f32.mxu0 %vm60_vm0, %v43_v50  ;;  %3477 = vmatprep.subr.bf16.mxu0 %v3777_v14 }
  0x10   :  { %3168 = vmatmul.mubr.msk.f32.gmra.mrb[2].mxu1 %vm60_vm0, %v48_v18  ;;  %3162 = vmatmul.mubr.msk.f32.gmra.mrb[2].mxu0 %vm60_vm0, %v44_v51  ;;  %v327_v3 = vld [vmem:[#allocation4 + $0x8] sm:$0xff] }
  0x11   :  { %3467 = vmatpush3.bf16.msra.mxu1 %v3909_v19  ;;  %3178 = vmatprep.mubr.msk.f32.mxu1 %vm3778_vm1, %v3779_v20 }
  0x12   :  { %3468 = vmatprep.subr.bf16.mxu1 %v3777_v14  ;;  %3200 = vmatprep.mubr.msk.f32.mxu0 %vm3778_vm1, %v3779_v20 }
  0x13   :  { %3479 = vmatpush3.bf16.msra.mxu0 %v3973_v54 }
  0x14   :  { %3179 = vmatmul.mubr.msk.f32.vlgmr.msra.gmra.mrb[4].mxu1 %vm60_vm0, %v206_v21  ;;  %3480 = vmatprep.subr.bf16.mxu0 %v3777_v14  ;;  %v330_v21 = vld [vmem:[#allocation5 + $0x8] sm:$0xff] }
  0x15   :  { %3470 = vmatpush3.bf16.msra.mxu1 %v3886_v12  ;;  %3189 = vmatprep.mubr.msk.f32.mxu1 %vm3778_vm1, %v3779_v20 }
  0x16   :  { %3471 = vmatprep.subr.bf16.mxu1 %v3777_v14 }
  0x19   :  { %3473 = vmatpush3.bf16.msra.mxu1 %v3909_v19 }
  0x1a   :  { %3486 = vmatprep.subr.bf16.mxu1 %v3777_v14 }
  0xdf   :  { %v3928_v23 = vpop.f32.mrb[0].mxu1  ;;  %v3930_v24 = vpop.f32.mrb[0].mxu0 }
  0xe0   :  { %v3932_v25 = vpop.f32.mrb[1].mxu1  ;;  %v151_v26 = vpop.f32.mrb[1].mxu0  ;;  %v157_v7 = vadd.f32 %v3930_v24, %v3937_v27 }
  0xe1   :  { %v152_v29 = vadd.f32 %v3937_v27, %v151_v26 }
  0xe3   :  { %v3939_v28 = vpop.f32.mrb[2].mxu1  ;;  %v4023_v4 = vpop.f32.mrb[2].mxu0 }
  0xe4   :  { %v3942_v30 = vpop.f32.mrb[3].mxu1  ;;  %v4025_v5 = vpop.f32.mrb[3].mxu0 }
  0xe7   :  { %v282_v31 = vpop.f32.mrb[4].mxu1 }
  0xe8   :  { %v286_v32 = vadd.f32 %v282_v31, %v152_v29  ;;  %v3180_v33 = vpop.f32.mrb[5].mxu1 }
  0xea   :  { %3648 = vtanh.f32 %v286_v32  ;;  %v2950_v36 = vmul.f32 -1.442695, %v286_v32 }
  0xec   :  { %3650 = vpow2.f32 %v2950_v36 }
  0xf4   :  { %v3649_v34 = vpop.eup %3648 }
  0xf5   :  { %300 = vrot.lane.b32.xlu0 %v3649_v34, %s3780_s23 }
  0xf6   :  { %v3651_v37 = vpop.eup %3650 }
  0xf7   :  { %v290_v38 = vadd.f32 1.0, %v3651_v37 }
  0xf9   :  { %295 = vrot.lane.b32.xlu0 %v207_v35, %s3781_s24  ;;  %3652 = vrcp.f32 %v290_v38 }
 0x103   :  { %v3653_v39 = vpop.eup %3652 }
 0x167   :  { %v301_v40 = vpop.permute.xlu0 %300 }
 0x168   :  { %v303_v41 = vmul.f32 %v3653_v39, %v301_v40 }
 0x16a   :  { %305 = vrot.lane.b32.xlu1 %v303_v41, %s3781_s24 }
 0x16b   :  { %v296_v42 = vpop.permute.xlu0 %295 }
 0x16c   :  { %v298_v43 = vmul.f32 %v3653_v39, %v296_v42 }
 0x1dc   :  { %v306_v44 = vpop.permute.xlu1 %305 }
 0x1dd   :  { %v308_v45 = vadd.f32 %v306_v44, %v298_v43 }
 0x1df   :  { %3654 = vtanh.f32 %v308_v45 }
 0x1e9   :  { %v3655_v46 = vpop.eup %3654 }
 0x1ea   :  { %311 = vrot.lane.b32.xlu1 %v3655_v46, %s3780_s23 }
 0x1ee   :  { %321 = vrot.lane.b32.xlu1 %v308_v45, %s3782_s25 }
 0x25c   :  { %v312_v56 = vpop.permute.xlu1 %311 }
 0x25d   :  { %v314_v57 = vmul.f32 %v3653_v39, %v312_v56 }
 0x25f   :  { %316 = vrot.lane.b32.xlu0 %v314_v57, %s3781_s24 }
 0x260   :  { %v322_v58 = vpop.permute.xlu1 %321 }
 0x261   :  { %324 = vst.msk [vmem:[#allocation5] sm:$0xff] %vm60_vm0, %v322_v58 }
 0x268   :  { %v328_v18 = vld [vmem:[#allocation5] sm:$0xff] }
 0x2d1   :  { %v317_v59 = vpop.permute.xlu0 %316 }
 0x2d2   :  { %319 = vst.msk [vmem:[#allocation4] sm:$0xff] %vm60_vm0, %v317_v59 }
 0x2d9   :  { %v325_v1 = vld [vmem:[#allocation4] sm:$0xff] }
 0x2da   :  { %3190 = vmatmul.mubr.msk.f32.vlgmr.msra.gmra.mrb[6].mxu1 %vm60_vm0, %v325_v1  ;;  %3201 = vmatmul.mubr.msk.f32.vlgmr.msra.gmra.mrb[4].mxu0 %vm60_vm0, %v325_v1  ;;  %v162_v1 = vadd.f32 %v3937_v27, %v4025_v5 }
 0x2db   :  { %3482 = vmatpush3.bf16.msra.mxu0 %v3992_v62  ;;  %3211 = vmatprep.mubr.msk.f32.mxu0 %vm3778_vm1, %v3779_v20 }
 0x2dc   :  { %3483 = vmatprep.subr.bf16.mxu0 %v3777_v14  ;;  %3488 = vmatpush3.bf16.msra.mxu1 %v3886_v12 }
 0x2dd   :  { %3489 = vmatprep.subr.bf16.mxu1 %v3777_v14  ;;  %3222 = vmatprep.mubr.msk.f32.mxu1 %vm3778_vm1, %v3779_v20 }
 0x2df   :  { %3485 = vmatpush3.bf16.msra.mxu0 %v4003_v2 }
 0x2e0   :  { %3491 = vmatpush3.bf16.msra.mxu1 %v3909_v19  ;;  %3504 = vmatprep.subr.bf16.mxu0 %v3777_v14 }
 0x2e1   :  { %3492 = vmatprep.subr.bf16.mxu1 %v3777_v14 }
 0x2e2   :  { %3212 = vmatmul.mubr.msk.f32.vlgmr.msra.gmra.mrb[4].mxu0 %vm60_vm0, %v327_v3 }
 0x2e3   :  { %3506 = vmatpush3.bf16.msra.mxu0 %v3886_v12  ;;  %3255 = vmatprep.mubr.msk.f32.mxu0 %vm3778_vm1, %v3779_v20 }
 0x2e4   :  { %3507 = vmatprep.subr.bf16.mxu0 %v3777_v14 }
 0x2e7   :  { %3509 = vmatpush3.bf16.msra.mxu0 %v3909_v19 }
 0x2e8   :  { %3510 = vmatprep.subr.bf16.mxu0 %v3777_v14 }
 0x3ad   :  { %v405_v8 = vpop.f32.mrb[6].mxu1 }
 0x3ae   :  { %v409_v9 = vadd.f32 %v405_v8, %v157_v7  ;;  %v3191_v10 = vpop.f32.mrb[7].mxu1 }
 0x3b0   :  { %3656 = vtanh.f32 %v409_v9  ;;  %v2952_v24 = vmul.f32 -1.442695, %v409_v9 }
 0x3b5   :  { %v592_v13 = vpop.f32.mrb[4].mxu0 }
 0x3b6   :  { %v3618_v15 = vadd.f32 %v4036_v11, %v592_v13  ;;  %v3213_v16 = vpop.f32.mrb[5].mxu0 }
 0x3b8   :  { %3658 = vtanh.f32 %v3618_v15  ;;  %v2956_v26 = vmul.f32 -1.442695, %v3618_v15 }
 0x3b9   :  { %3660 = vpow2.f32 %v2952_v24 }
 0x3ba   :  { %v3657_v17 = vpop.eup %3656  ;;  %3662 = vpow2.f32 %v2956_v26 }
 0x3bb   :  { %423 = vrot.lane.b32.xlu0 %v3657_v17, %s3780_s23 }
 0x3bf   :  { %418 = vrot.lane.b32.xlu0 %v328_v18, %s3781_s24 }
 0x3c2   :  { %v3659_v22 = vpop.eup %3658 }
 0x3c3   :  { %610 = vrot.lane.b32.xlu1 %v3659_v22, %s3780_s23  ;;  %605 = vrot.lane.b32.xlu0 %v330_v21, %s3781_s24  ;;  %v3661_v29 = vpop.eup %3660 }
 0x3c4   :  { %v413_v31 = vadd.f32 1.0, %v3661_v29  ;;  %v3663_v32 = vpop.eup %3662 }
 0x3c5   :  { %v600_v33 = vadd.f32 1.0, %v3663_v32 }
 0x3c6   :  { %3664 = vrcp.f32 %v413_v31 }
 0x3c7   :  { %3666 = vrcp.f32 %v600_v33 }
 0x3d0   :  { %v3665_v34 = vpop.eup %3664 }
 0x3d1   :  { %v3667_v37 = vpop.eup %3666 }
 0x42d   :  { %v424_v35 = vpop.permute.xlu0 %423 }
 0x42e   :  { %v426_v36 = vmul.f32 %v3665_v34, %v424_v35 }
 0x430   :  { %428 = vrot.lane.b32.xlu1 %v426_v36, %s3781_s24 }
 0x431   :  { %v419_v40 = vpop.permute.xlu0 %418 }
 0x432   :  { %v421_v41 = vmul.f32 %v3665_v34, %v419_v40 }
 0x435   :  { %v611_v38 = vpop.permute.xlu1 %610  ;;  %v606_v44 = vpop.permute.xlu0 %605 }
 0x436   :  { %v613_v39 = vmul.f32 %v3667_v37, %v611_v38  ;;  %v608_v45 = vmul.f32 %v3667_v37, %v606_v44 }
 0x438   :  { %615 = vrot.lane.b32.xlu1 %v613_v39, %s3781_s24 }
 0x4a2   :  { %v429_v42 = vpop.permute.xlu1 %428 }
 0x4a3   :  { %v431_v43 = vadd.f32 %v429_v42, %v421_v41 }
 0x4a5   :  { %3668 = vtanh.f32 %v431_v43 }
 0x4aa   :  { %v616_v46 = vpop.permute.xlu1 %615 }
 0x4ab   :  { %v618_v47 = vadd.f32 %v616_v46, %v608_v45 }
 0x4ad   :  { %3670 = vtanh.f32 %v618_v47 }
 0x4af   :  { %v3669_v48 = vpop.eup %3668 }
 0x4b0   :  { %434 = vrot.lane.b32.xlu0 %v3669_v48, %s3780_s23 }
 0x4b7   :  { %v3671_v50 = vpop.eup %3670 }
 0x4b8   :  { %621 = vrot.lane.b32.xlu1 %v3671_v50, %s3780_s23 }
 0x522   :  { %v435_v51 = vpop.permute.xlu0 %434 }
 0x523   :  { %v437_v52 = vmul.f32 %v3665_v34, %v435_v51 }
 0x525   :  { %631 = vrot.lane.b32.xlu0 %v437_v52, %s3781_s24 }
 0x529   :  { %637 = vrot.lane.b32.xlu0 %v431_v43, %s3782_s25 }
 0x52a   :  { %v622_v53 = vpop.permute.xlu1 %621 }
 0x52b   :  { %v624_v55 = vmul.f32 %v3667_v37, %v622_v53 }
 0x52d   :  { %642 = vrot.lane.b32.xlu0 %v618_v47, %s3782_s25  ;;  %626 = vrot.lane.b32.xlu1 %v624_v55, %s3781_s24 }
 0x597   :  { %v632_v56 = vpop.permute.xlu0 %631 }
 0x598   :  { %634 = vst.msk [vmem:[#allocation4] sm:$0xff] %vm60_vm0, %v632_v56 }
 0x59b   :  { %v638_v57 = vpop.permute.xlu0 %637 }
 0x59c   :  { %640 = vst.msk [vmem:[#allocation5] sm:$0xff] %vm60_vm0, %v638_v57 }
 0x59f   :  { %v643_v58 = vpop.permute.xlu0 %642  ;;  %v627_v59 = vpop.permute.xlu1 %626  ;;  %v646_v60 = vld [vmem:[#allocation4] sm:$0xff] }
 0x5a0   :  { %645 = vst.msk [vmem:[#allocation5 + $0x8] sm:$0xff] %vm60_vm0, %v643_v58  ;;  %629 = vst.msk [vmem:[#allocation2] sm:$0xff] %vm60_vm0, %v627_v59  ;;  %3223 = vmatmul.mubr.msk.f32.vlgmr.msra.gmra.mrb[8].mxu1 %vm60_vm0, %v646_v60  ;;  %v167_v58 = vadd.f32 %v4023_v4, %v3937_v27 }
 0x5a1   :  { %635 = vst.msk [vmem:[#allocation4 + $0x8] sm:$0xff] %vm60_vm0, %v627_v59  ;;  %3494 = vmatpush3.bf16.msra.mxu1 %v3955_v49  ;;  %3233 = vmatprep.mubr.msk.f32.mxu1 %vm3778_vm1, %v3779_v20 }
 0x5a2   :  { %3495 = vmatprep.subr.bf16.mxu1 %v3777_v14 }
 0x5a3   :  { %v648_v61 = vld [vmem:[#allocation5] sm:$0xff] }
 0x5a4   :  { %737 = vrot.lane.b32.xlu0 %v648_v61, %s3781_s24 }
 0x5a5   :  { %3497 = vmatpush3.bf16.msra.mxu1 %v3973_v54 }
 0x5a6   :  { %3498 = vmatprep.subr.bf16.mxu1 %v3777_v14 }
 0x5a7   :  { %v649_v63 = vld [vmem:[#allocation5 + $0x8] sm:$0xff] }
 0x5a8   :  { %3234 = vmatmul.mubr.msk.f32.vlgmr.msra.gmra.mrb[10].mxu1 %vm60_vm0, %v646_v60  ;;  %924 = vrot.lane.b32.xlu0 %v649_v63, %s3781_s24  ;;  %v647_v0 = vld [vmem:[#allocation4 + $0x8] sm:$0xff] }
 0x5a9   :  { %3500 = vmatpush3.bf16.msra.mxu1 %v3992_v62  ;;  %3244 = vmatprep.mubr.msk.f32.mxu1 %vm3778_vm1, %v3779_v20 }
 0x5aa   :  { %3501 = vmatprep.subr.bf16.mxu1 %v3777_v14 }
 0x5ad   :  { %3503 = vmatpush3.bf16.msra.mxu1 %v4003_v2 }
 0x5ae   :  { %3522 = vmatprep.subr.bf16.mxu1 %v3777_v14 }
 0x5b0   :  { %3245 = vmatmul.mubr.msk.f32.vlgmr.msra.gmra.mrb[10].mxu1 %vm60_vm0, %v647_v0 }
 0x5b1   :  { %3524 = vmatpush3.bf16.msra.mxu1 %v3886_v12  ;;  %3288 = vmatprep.mubr.msk.f32.mxu1 %vm3778_vm1, %v3779_v20 }
 0x5b2   :  { %3525 = vmatprep.subr.bf16.mxu1 %v3777_v14 }
 0x5b5   :  { %3527 = vmatpush3.bf16.msra.mxu1 %v3909_v19 }
 0x5b6   :  { %3528 = vmatprep.subr.bf16.mxu1 %v3777_v14 }
 0x616   :  { %v738_v34 = vpop.permute.xlu0 %737 }
 0x61a   :  { %v925_v39 = vpop.permute.xlu0 %924 }
 0x673   :  { %v724_v3 = vpop.f32.mrb[8].mxu1 }
 0x674   :  { %v728_v6 = vadd.f32 %v724_v3, %v162_v1  ;;  %v3224_v7 = vpop.f32.mrb[9].mxu1 }
 0x676   :  { %3672 = vtanh.f32 %v728_v6  ;;  %v2958_v16 = vmul.f32 -1.442695, %v728_v6 }
 0x680   :  { %v3673_v8 = vpop.eup %3672 }
 0x681   :  { %742 = vrot.lane.b32.xlu1 %v3673_v8, %s3780_s23 }
 0x683   :  { %v911_v9 = vpop.f32.mrb[10].mxu1 }
 0x684   :  { %v3619_v10 = vadd.f32 %v4036_v11, %v911_v9  ;;  %v3246_v13 = vpop.f32.mrb[11].mxu1 }
 0x686   :  { %3674 = vtanh.f32 %v3619_v10  ;;  %v2962_v18 = vmul.f32 -1.442695, %v3619_v10 }
 0x687   :  { %3676 = vpow2.f32 %v2958_v16 }
 0x688   :  { %3678 = vpow2.f32 %v2962_v18 }
 0x690   :  { %v3675_v15 = vpop.eup %3674 }
 0x691   :  { %929 = vrot.lane.b32.xlu1 %v3675_v15, %s3780_s23  ;;  %v3677_v17 = vpop.eup %3676 }
 0x692   :  { %v732_v5 = vadd.f32 1.0, %v3677_v17  ;;  %v3679_v21 = vpop.eup %3678 }
 0x693   :  { %v919_v29 = vadd.f32 1.0, %v3679_v21 }
 0x694   :  { %3680 = vrcp.f32 %v732_v5 }
 0x695   :  { %3682 = vrcp.f32 %v919_v29 }
 0x69e   :  { %v3681_v22 = vpop.eup %3680 }
 0x69f   :  { %v3683_v31 = vpop.eup %3682  ;;  %v740_v35 = vmul.f32 %v3681_v22, %v738_v34 }
 0x6a0   :  { %v927_v40 = vmul.f32 %v3683_v31, %v925_v39 }
 0x6f3   :  { %v743_v24 = vpop.permute.xlu1 %742 }
 0x6f4   :  { %v745_v26 = vmul.f32 %v3681_v22, %v743_v24 }
 0x6f6   :  { %747 = vrot.lane.b32.xlu1 %v745_v26, %s3781_s24 }
 0x703   :  { %v930_v32 = vpop.permute.xlu1 %929 }
 0x704   :  { %v932_v33 = vmul.f32 %v3683_v31, %v930_v32 }
 0x706   :  { %934 = vrot.lane.b32.xlu1 %v932_v33, %s3781_s24 }
 0x768   :  { %v748_v36 = vpop.permute.xlu1 %747 }
 0x769   :  { %v750_v37 = vadd.f32 %v748_v36, %v740_v35 }
 0x76b   :  { %3684 = vtanh.f32 %v750_v37 }
 0x775   :  { %v3685_v38 = vpop.eup %3684 }
 0x776   :  { %753 = vrot.lane.b32.xlu0 %v3685_v38, %s3780_s23 }
 0x778   :  { %v935_v41 = vpop.permute.xlu1 %934 }
 0x779   :  { %v937_v42 = vadd.f32 %v935_v41, %v927_v40 }
 0x77b   :  { %3686 = vtanh.f32 %v937_v42 }
 0x785   :  { %v3687_v43 = vpop.eup %3686 }
 0x786   :  { %940 = vrot.lane.b32.xlu1 %v3687_v43, %s3780_s23 }
 0x7e8   :  { %v754_v44 = vpop.permute.xlu0 %753 }
 0x7e9   :  { %v756_v45 = vmul.f32 %v3681_v22, %v754_v44 }
 0x7eb   :  { %950 = vrot.lane.b32.xlu0 %v756_v45, %s3781_s24 }
 0x7ef   :  { %956 = vrot.lane.b32.xlu0 %v750_v37, %s3782_s25 }
 0x7f3   :  { %961 = vrot.lane.b32.xlu0 %v937_v42, %s3782_s25 }
 0x7f8   :  { %v941_v46 = vpop.permute.xlu1 %940 }
 0x7f9   :  { %v943_v47 = vmul.f32 %v3683_v31, %v941_v46 }
 0x7fb   :  { %945 = vrot.lane.b32.xlu1 %v943_v47, %s3781_s24  ;;  %v172_v47 = vadd.f32 %v3937_v27, %v3932_v25 }
 0x85d   :  { %v951_v48 = vpop.permute.xlu0 %950 }
 0x85e   :  { %953 = vst.msk [vmem:[#allocation4] sm:$0xff] %vm60_vm0, %v951_v48 }
 0x861   :  { %v957_v50 = vpop.permute.xlu0 %956 }
 0x862   :  { %959 = vst.msk [vmem:[#allocation5] sm:$0xff] %vm60_vm0, %v957_v50 }
 0x865   :  { %v962_v51 = vpop.permute.xlu0 %961  ;;  %v965_v52 = vld [vmem:[#allocation4] sm:$0xff] }
 0x866   :  { %964 = vst.msk [vmem:[#allocation5 + $0x8] sm:$0xff] %vm60_vm0, %v962_v51  ;;  %3256 = vmatmul.mubr.msk.f32.vlgmr.msra.gmra.mrb[6].mxu0 %vm60_vm0, %v965_v52 }
 0x867   :  { %3512 = vmatpush3.bf16.msra.mxu0 %v3955_v49  ;;  %3266 = vmatprep.mubr.msk.f32.mxu0 %vm3778_vm1, %v3779_v20 }
 0x868   :  { %3513 = vmatprep.subr.bf16.mxu0 %v3777_v14 }
 0x869   :  { %v967_v53 = vld [vmem:[#allocation5] sm:$0xff] }
 0x86a   :  { %1056 = vrot.lane.b32.xlu0 %v967_v53, %s3781_s24 }
 0x86b   :  { %3515 = vmatpush3.bf16.msra.mxu0 %v3973_v54 }
 0x86c   :  { %3516 = vmatprep.subr.bf16.mxu0 %v3777_v14 }
 0x86d   :  { %v946_v55 = vpop.permute.xlu1 %945  ;;  %v968_v56 = vld [vmem:[#allocation5 + $0x8] sm:$0xff] }
 0x86e   :  { %948 = vst.msk [vmem:[#allocation2 + $0x8] sm:$0xff] %vm60_vm0, %v946_v55  ;;  %954 = vst.msk [vmem:[#allocation4 + $0x8] sm:$0xff] %vm60_vm0, %v946_v55  ;;  %3267 = vmatmul.mubr.msk.f32.vlgmr.msra.gmra.mrb[8].mxu0 %vm60_vm0, %v965_v52  ;;  %1243 = vrot.lane.b32.xlu0 %v968_v56, %s3781_s24 }
 0x86f   :  { %3518 = vmatpush3.bf16.msra.mxu0 %v3992_v62  ;;  %3277 = vmatprep.mubr.msk.f32.mxu0 %vm3778_vm1, %v3779_v20 }
 0x870   :  { %3519 = vmatprep.subr.bf16.mxu0 %v3777_v14 }
 0x873   :  { %3521 = vmatpush3.bf16.msra.mxu0 %v4003_v2 }
 0x874   :  { %3540 = vmatprep.subr.bf16.mxu0 %v3777_v14 }
 0x875   :  { %v966_v57 = vld [vmem:[#allocation4 + $0x8] sm:$0xff] }
 0x876   :  { %3278 = vmatmul.mubr.msk.f32.vlgmr.msra.gmra.mrb[8].mxu0 %vm60_vm0, %v966_v57 }
 0x877   :  { %3542 = vmatpush3.bf16.msra.mxu0 %v3886_v12  ;;  %3321 = vmatprep.mubr.msk.f32.mxu0 %vm3778_vm1, %v3779_v20 }
 0x878   :  { %3543 = vmatprep.subr.bf16.mxu0 %v3777_v14 }
 0x87b   :  { %3545 = vmatpush3.bf16.msra.mxu0 %v3909_v19 }
 0x87c   :  { %3546 = vmatprep.subr.bf16.mxu0 %v3777_v14 }
 0x8dc   :  { %v1057_v5 = vpop.permute.xlu0 %1056 }
 0x8e0   :  { %v1244_v29 = vpop.permute.xlu0 %1243 }
 0x939   :  { %v1043_v59 = vpop.f32.mrb[6].mxu0 }
 0x93a   :  { %v1047_v60 = vadd.f32 %v1043_v59, %v167_v58  ;;  %v3257_v61 = vpop.f32.mrb[7].mxu0 }
 0x93c   :  { %3688 = vtanh.f32 %v1047_v60  ;;  %v2964_v19 = vmul.f32 -1.442695, %v1047_v60 }
 0x946   :  { %v3689_v63 = vpop.eup %3688 }
 0x947   :  { %1061 = vrot.lane.b32.xlu1 %v3689_v63, %s3780_s23 }
 0x949   :  { %v1230_v12 = vpop.f32.mrb[8].mxu0 }
 0x94a   :  { %v3620_v0 = vadd.f32 %v4036_v11, %v1230_v12  ;;  %v3279_v1 = vpop.f32.mrb[9].mxu0 }
 0x94c   :  { %3690 = vtanh.f32 %v3620_v0  ;;  %v2968_v7 = vmul.f32 -1.442695, %v3620_v0 }
 0x94d   :  { %3692 = vpow2.f32 %v2964_v19 }
 0x94e   :  { %3694 = vpow2.f32 %v2968_v7 }
 0x956   :  { %v3691_v3 = vpop.eup %3690 }
 0x957   :  { %1248 = vrot.lane.b32.xlu1 %v3691_v3, %s3780_s23  ;;  %v3693_v6 = vpop.eup %3692 }
 0x958   :  { %v1051_v4 = vadd.f32 1.0, %v3693_v6  ;;  %v3695_v8 = vpop.eup %3694 }
 0x959   :  { %v1238_v15 = vadd.f32 1.0, %v3695_v8 }
 0x95a   :  { %3696 = vrcp.f32 %v1051_v4 }
 0x95b   :  { %3698 = vrcp.f32 %v1238_v15 }
 0x964   :  { %v3697_v9 = vpop.eup %3696 }
 0x965   :  { %v3699_v16 = vpop.eup %3698  ;;  %v1059_v21 = vmul.f32 %v3697_v9, %v1057_v5 }
 0x966   :  { %v1246_v31 = vmul.f32 %v3699_v16, %v1244_v29 }
 0x9b9   :  { %v1062_v10 = vpop.permute.xlu1 %1061 }
 0x9ba   :  { %v1064_v13 = vmul.f32 %v3697_v9, %v1062_v10 }
 0x9bc   :  { %1066 = vrot.lane.b32.xlu1 %v1064_v13, %s3781_s24 }
 0x9c9   :  { %v1249_v17 = vpop.permute.xlu1 %1248 }
 0x9ca   :  { %v1251_v18 = vmul.f32 %v3699_v16, %v1249_v17 }
 0x9cc   :  { %1253 = vrot.lane.b32.xlu1 %v1251_v18, %s3781_s24 }
 0xa2e   :  { %v1067_v22 = vpop.permute.xlu1 %1066 }
 0xa2f   :  { %v1069_v24 = vadd.f32 %v1067_v22, %v1059_v21 }
 0xa31   :  { %3700 = vtanh.f32 %v1069_v24 }
 0xa3b   :  { %v3701_v26 = vpop.eup %3700 }
 0xa3c   :  { %1072 = vrot.lane.b32.xlu0 %v3701_v26, %s3780_s23 }
 0xa3e   :  { %v1254_v32 = vpop.permute.xlu1 %1253 }
 0xa3f   :  { %v1256_v33 = vadd.f32 %v1254_v32, %v1246_v31 }
 0xa41   :  { %3702 = vtanh.f32 %v1256_v33 }
 0xa4b   :  { %v3703_v34 = vpop.eup %3702 }
 0xa4c   :  { %1259 = vrot.lane.b32.xlu1 %v3703_v34, %s3780_s23 }
 0xaae   :  { %v1073_v35 = vpop.permute.xlu0 %1072 }
 0xaaf   :  { %v1075_v36 = vmul.f32 %v3697_v9, %v1073_v35 }
 0xab1   :  { %1269 = vrot.lane.b32.xlu0 %v1075_v36, %s3781_s24 }
 0xab5   :  { %1275 = vrot.lane.b32.xlu0 %v1069_v24, %s3782_s25 }
 0xab9   :  { %1280 = vrot.lane.b32.xlu0 %v1256_v33, %s3782_s25 }
 0xabe   :  { %v1260_v37 = vpop.permute.xlu1 %1259 }
 0xabf   :  { %v1262_v38 = vmul.f32 %v3699_v16, %v1260_v37  ;;  %v177_v37 = vadd.f32 %v3928_v23, %v3937_v27 }
 0xac1   :  { %1264 = vrot.lane.b32.xlu1 %v1262_v38, %s3781_s24 }
 0xb23   :  { %v1270_v39 = vpop.permute.xlu0 %1269 }
 0xb24   :  { %1272 = vst.msk [vmem:[#allocation4] sm:$0xff] %vm60_vm0, %v1270_v39 }
 0xb27   :  { %v1276_v40 = vpop.permute.xlu0 %1275 }
 0xb28   :  { %1278 = vst.msk [vmem:[#allocation5] sm:$0xff] %vm60_vm0, %v1276_v40 }
 0xb2b   :  { %v1281_v41 = vpop.permute.xlu0 %1280  ;;  %v1284_v42 = vld [vmem:[#allocation4] sm:$0xff] }
 0xb2c   :  { %1283 = vst.msk [vmem:[#allocation5 + $0x8] sm:$0xff] %vm60_vm0, %v1281_v41  ;;  %3289 = vmatmul.mubr.msk.f32.vlgmr.msra.gmra.mrb[12].mxu1 %vm60_vm0, %v1284_v42 }
 0xb2d   :  { %3530 = vmatpush3.bf16.msra.mxu1 %v3955_v49  ;;  %3299 = vmatprep.mubr.msk.f32.mxu1 %vm3778_vm1, %v3779_v20 }
 0xb2e   :  { %3531 = vmatprep.subr.bf16.mxu1 %v3777_v14 }
 0xb2f   :  { %v1286_v43 = vld [vmem:[#allocation5] sm:$0xff] }
 0xb30   :  { %1375 = vrot.lane.b32.xlu0 %v1286_v43, %s3781_s24 }
 0xb31   :  { %3533 = vmatpush3.bf16.msra.mxu1 %v3973_v54 }
 0xb32   :  { %3534 = vmatprep.subr.bf16.mxu1 %v3777_v14 }
 0xb33   :  { %v1265_v44 = vpop.permute.xlu1 %1264  ;;  %v1287_v45 = vld [vmem:[#allocation5 + $0x8] sm:$0xff] }
 0xb34   :  { %1267 = vst.msk [vmem:[#allocation2 + $0x10] sm:$0xff] %vm60_vm0, %v1265_v44  ;;  %1273 = vst.msk [vmem:[#allocation4 + $0x8] sm:$0xff] %vm60_vm0, %v1265_v44  ;;  %3300 = vmatmul.mubr.msk.f32.vlgmr.msra.gmra.mrb[14].mxu1 %vm60_vm0, %v1284_v42  ;;  %1562 = vrot.lane.b32.xlu0 %v1287_v45, %s3781_s24 }
 0xb35   :  { %3536 = vmatpush3.bf16.msra.mxu1 %v3992_v62  ;;  %3310 = vmatprep.mubr.msk.f32.mxu1 %vm3778_vm1, %v3779_v20 }
 0xb36   :  { %3537 = vmatprep.subr.bf16.mxu1 %v3777_v14 }
 0xb39   :  { %3539 = vmatpush3.bf16.msra.mxu1 %v4003_v2 }
 0xb3a   :  { %3558 = vmatprep.subr.bf16.mxu1 %v3777_v14 }
 0xb3b   :  { %v1285_v46 = vld [vmem:[#allocation4 + $0x8] sm:$0xff] }
 0xb3c   :  { %3311 = vmatmul.mubr.msk.f32.vlgmr.msra.gmra.mrb[14].mxu1 %vm60_vm0, %v1285_v46 }
 0xb3d   :  { %3354 = vmatprep.mubr.msk.f32.mxu1 %vm3778_vm1, %v3779_v20 }
 0xba2   :  { %v1376_v7 = vpop.permute.xlu0 %1375 }
 0xba6   :  { %v1563_v13 = vpop.permute.xlu0 %1562 }
 0xbff   :  { %v1362_v48 = vpop.f32.mrb[12].mxu1 }
 0xc00   :  { %v1366_v50 = vadd.f32 %v1362_v48, %v172_v47  ;;  %v3290_v51 = vpop.f32.mrb[13].mxu1 }
 0xc02   :  { %3704 = vtanh.f32 %v1366_v50  ;;  %v2970_v58 = vmul.f32 -1.442695, %v1366_v50 }
 0xc0c   :  { %v3705_v52 = vpop.eup %3704 }
 0xc0d   :  { %1380 = vrot.lane.b32.xlu1 %v3705_v52, %s3780_s23 }
 0xc0f   :  { %v1549_v53 = vpop.f32.mrb[14].mxu1 }
 0xc10   :  { %v3621_v55 = vadd.f32 %v4036_v11, %v1549_v53  ;;  %v3312_v56 = vpop.f32.mrb[15].mxu1 }
 0xc12   :  { %3706 = vtanh.f32 %v3621_v55  ;;  %v2974_v60 = vmul.f32 -1.442695, %v3621_v55 }
 0xc13   :  { %3708 = vpow2.f32 %v2970_v58 }
 0xc14   :  { %3710 = vpow2.f32 %v2974_v60 }
 0xc1c   :  { %v3707_v57 = vpop.eup %3706 }
 0xc1d   :  { %1567 = vrot.lane.b32.xlu1 %v3707_v57, %s3780_s23  ;;  %v3709_v59 = vpop.eup %3708 }
 0xc1e   :  { %v1370_v25 = vadd.f32 1.0, %v3709_v59  ;;  %v3711_v61 = vpop.eup %3710 }
 0xc1f   :  { %v1557_v1 = vadd.f32 1.0, %v3711_v61 }
 0xc20   :  { %3712 = vrcp.f32 %v1370_v25 }
 0xc21   :  { %3714 = vrcp.f32 %v1557_v1 }
 0xc2a   :  { %v3713_v63 = vpop.eup %3712 }
 0xc2b   :  { %v3715_v3 = vpop.eup %3714  ;;  %v1378_v4 = vmul.f32 %v3713_v63, %v1376_v7 }
 0xc2c   :  { %v1565_v15 = vmul.f32 %v3715_v3, %v1563_v13 }
 0xc7f   :  { %v1381_v12 = vpop.permute.xlu1 %1380 }
 0xc80   :  { %v1383_v0 = vmul.f32 %v3713_v63, %v1381_v12 }
 0xc82   :  { %1385 = vrot.lane.b32.xlu1 %v1383_v0, %s3781_s24 }
 0xc8f   :  { %v1568_v19 = vpop.permute.xlu1 %1567 }
 0xc90   :  { %v1570_v6 = vmul.f32 %v3715_v3, %v1568_v19  ;;  %v1927_v19 = vld [vmem:[%s4430_s4] sm:$0xff] }
 0xc92   :  { %1572 = vrot.lane.b32.xlu1 %v1570_v6, %s3781_s24  ;;  %v1928_v6 = vld [vmem:[%s4430_s4 + $0x8] sm:$0xff] }
 0xc93   :  { %v3559_v7 = vpack.c.bf16 %v1928_v6, %v1927_v19 }
 0xc95   :  { %3560 = vmatpush3.bf16.msra.mxu1 %v3559_v7 }
 0xc96   :  { %3561 = vmatprep.subr.bf16.mxu1 %v3777_v14 }
 0xcf4   :  { %v1386_v8 = vpop.permute.xlu1 %1385 }
 0xcf5   :  { %v1388_v9 = vadd.f32 %v1386_v8, %v1378_v4  ;;  %v1929_v4 = vld [vmem:[%s4430_s4 + $0x10] sm:$0xff]  ;;  %v1930_v8 = vld [vmem:[%s4430_s4 + $0x18] sm:$0xff] }
 0xcf7   :  { %3716 = vtanh.f32 %v1388_v9 }
 0xd01   :  { %v3717_v10 = vpop.eup %3716 }
 0xd02   :  { %1391 = vrot.lane.b32.xlu0 %v3717_v10, %s3780_s23 }
 0xd04   :  { %v1573_v16 = vpop.permute.xlu1 %1572 }
 0xd05   :  { %v1575_v17 = vadd.f32 %v1573_v16, %v1565_v15 }
 0xd07   :  { %3718 = vtanh.f32 %v1575_v17 }
 0xd11   :  { %v3719_v18 = vpop.eup %3718 }
 0xd12   :  { %1578 = vrot.lane.b32.xlu1 %v3719_v18, %s3780_s23 }
 0xd74   :  { %v1392_v5 = vpop.permute.xlu0 %1391 }
 0xd75   :  { %v1394_v21 = vmul.f32 %v3713_v63, %v1392_v5 }
 0xd77   :  { %1588 = vrot.lane.b32.xlu0 %v1394_v21, %s3781_s24 }
 0xd7b   :  { %1594 = vrot.lane.b32.xlu0 %v1388_v9, %s3782_s25  ;;  %v3562_v9 = vpack.c.bf16 %v1930_v8, %v1929_v4  ;;  %v2434_v4 = vld [vmem:[%s4434_s7 + $0x8] sm:$0xff] }
 0xd7d   :  { %3563 = vmatpush3.bf16.msra.mxu1 %v3562_v9 }
 0xd7e   :  { %3564 = vmatprep.subr.bf16.mxu1 %v3777_v14 }
 0xd7f   :  { %1599 = vrot.lane.b32.xlu0 %v1575_v17, %s3782_s25 }
 0xd84   :  { %v1579_v22 = vpop.permute.xlu1 %1578 }
 0xd85   :  { %v1581_v24 = vmul.f32 %v3715_v3, %v1579_v22 }
 0xd87   :  { %1583 = vrot.lane.b32.xlu1 %v1581_v24, %s3781_s24 }
 0xde9   :  { %v1589_v26 = vpop.permute.xlu0 %1588 }
 0xdea   :  { %1591 = vst.msk [vmem:[#allocation4] sm:$0xff] %vm60_vm0, %v1589_v26 }
 0xded   :  { %v1595_v29 = vpop.permute.xlu0 %1594 }
 0xdee   :  { %1597 = vst.msk [vmem:[#allocation5] sm:$0xff] %vm60_vm0, %v1595_v29 }
 0xdf1   :  { %v1600_v31 = vpop.permute.xlu0 %1599  ;;  %v1603_v32 = vld [vmem:[#allocation4] sm:$0xff] }
 0xdf2   :  { %1602 = vst.msk [vmem:[#allocation5 + $0x8] sm:$0xff] %vm60_vm0, %v1600_v31  ;;  %3322 = vmatmul.mubr.msk.f32.vlgmr.msra.gmra.mrb[10].mxu0 %vm60_vm0, %v1603_v32 }
 0xdf3   :  { %3548 = vmatpush3.bf16.msra.mxu0 %v3955_v49  ;;  %3332 = vmatprep.mubr.msk.f32.mxu0 %vm3778_vm1, %v3779_v20 }
 0xdf4   :  { %3549 = vmatprep.subr.bf16.mxu0 %v3777_v14 }
 0xdf5   :  { %v1605_v33 = vld [vmem:[#allocation5] sm:$0xff] }
 0xdf6   :  { %1694 = vrot.lane.b32.xlu0 %v1605_v33, %s3781_s24 }
 0xdf7   :  { %3551 = vmatpush3.bf16.msra.mxu0 %v3973_v54 }
 0xdf8   :  { %3552 = vmatprep.subr.bf16.mxu0 %v3777_v14 }
 0xdf9   :  { %v1584_v34 = vpop.permute.xlu1 %1583  ;;  %v1606_v35 = vld [vmem:[#allocation5 + $0x8] sm:$0xff] }
 0xdfa   :  { %1586 = vst.msk [vmem:[#allocation2 + $0x18] sm:$0xff] %vm60_vm0, %v1584_v34  ;;  %1592 = vst.msk [vmem:[#allocation4 + $0x8] sm:$0xff] %vm60_vm0, %v1584_v34  ;;  %3333 = vmatmul.mubr.msk.f32.vlgmr.msra.gmra.mrb[12].mxu0 %vm60_vm0, %v1603_v32  ;;  %1881 = vrot.lane.b32.xlu0 %v1606_v35, %s3781_s24 }
 0xdfb   :  { %3554 = vmatpush3.bf16.msra.mxu0 %v3992_v62  ;;  %3343 = vmatprep.mubr.msk.f32.mxu0 %vm3778_vm1, %v3779_v20 }
 0xdfc   :  { %3555 = vmatprep.subr.bf16.mxu0 %v3777_v14 }
 0xdff   :  { %3557 = vmatpush3.bf16.msra.mxu0 %v4003_v2 }
 0xe00   :  { %3576 = vmatprep.subr.bf16.mxu0 %v3777_v14 }
 0xe01   :  { %v1604_v36 = vld [vmem:[#allocation4 + $0x8] sm:$0xff] }
 0xe02   :  { %3344 = vmatmul.mubr.msk.f32.vlgmr.msra.gmra.mrb[12].mxu0 %vm60_vm0, %v1604_v36 }
 0xe03   :  { %3387 = vmatprep.mubr.msk.f32.mxu0 %vm3778_vm1, %v3779_v20  ;;  %3578 = vmatpush3.bf16.msra.mxu0 %v3559_v7  ;;  %v2433_v7 = vld [vmem:[%s4434_s7] sm:$0xff] }
 0xe04   :  { %3579 = vmatprep.subr.bf16.mxu0 %v3777_v14  ;;  %v4291_v8 = vpack.c.bf16 %v2434_v4, %v2433_v7 }
 0xe07   :  { %3581 = vmatpush3.bf16.msra.mxu0 %v3562_v9  ;;  %v2435_v9 = vld [vmem:[%s4434_s7 + $0x10] sm:$0xff] }
 0xe08   :  { %3582 = vmatprep.subr.bf16.mxu0 %v3777_v14 }
 0xe68   :  { %v1695_v58 = vpop.permute.xlu0 %1694 }
 0xe6c   :  { %v1882_v63 = vpop.permute.xlu0 %1881 }
 0xec5   :  { %v1681_v38 = vpop.f32.mrb[10].mxu0 }
 0xec6   :  { %v1685_v39 = vadd.f32 %v1681_v38, %v177_v37  ;;  %v3323_v40 = vpop.f32.mrb[11].mxu0 }
 0xec8   :  { %3720 = vtanh.f32 %v1685_v39  ;;  %v2976_v46 = vmul.f32 -1.442695, %v1685_v39 }
 0xed2   :  { %v3721_v41 = vpop.eup %3720 }
 0xed3   :  { %1699 = vrot.lane.b32.xlu1 %v3721_v41, %s3780_s23 }
 0xed5   :  { %v1868_v42 = vpop.f32.mrb[12].mxu0 }
 0xed6   :  { %v3622_v43 = vadd.f32 %v4036_v11, %v1868_v42  ;;  %v3345_v44 = vpop.f32.mrb[13].mxu0 }
 0xed8   :  { %3722 = vtanh.f32 %v3622_v43  ;;  %v2980_v48 = vmul.f32 -1.442695, %v3622_v43 }
 0xed9   :  { %3724 = vpow2.f32 %v2976_v46 }
 0xeda   :  { %3726 = vpow2.f32 %v2980_v48 }
 0xee2   :  { %v3723_v45 = vpop.eup %3722 }
 0xee3   :  { %1886 = vrot.lane.b32.xlu1 %v3723_v45, %s3780_s23  ;;  %v3725_v47 = vpop.eup %3724 }
 0xee4   :  { %v1689_v23 = vadd.f32 1.0, %v3725_v47  ;;  %v3727_v27 = vpop.eup %3726 }
 0xee5   :  { %v1876_v53 = vadd.f32 1.0, %v3727_v27 }
 0xee6   :  { %3728 = vrcp.f32 %v1689_v23 }
 0xee7   :  { %3730 = vrcp.f32 %v1876_v53 }
 0xef0   :  { %v3729_v50 = vpop.eup %3728 }
 0xef1   :  { %v3731_v55 = vpop.eup %3730  ;;  %v1697_v59 = vmul.f32 %v3729_v50, %v1695_v58  ;;  %v2353_v58 = vld [vmem:[%s4433_s6 + $0x8] sm:$0xff] }
 0xef2   :  { %v1884_v12 = vmul.f32 %v3731_v55, %v1882_v63 }
 0xf45   :  { %v1700_v51 = vpop.permute.xlu1 %1699 }
 0xf46   :  { %v1702_v52 = vmul.f32 %v3729_v50, %v1700_v51 }
 0xf48   :  { %1704 = vrot.lane.b32.xlu1 %v1702_v52, %s3781_s24 }
 0xf55   :  { %v1887_v56 = vpop.permute.xlu1 %1886 }
 0xf56   :  { %v1889_v57 = vmul.f32 %v3731_v55, %v1887_v56 }
 0xf58   :  { %1891 = vrot.lane.b32.xlu1 %v1889_v57, %s3781_s24  ;;  %v2352_v57 = vld [vmem:[%s4433_s6] sm:$0xff] }
 0xfba   :  { %v1705_v60 = vpop.permute.xlu1 %1704 }
 0xfbb   :  { %v1707_v25 = vadd.f32 %v1705_v60, %v1697_v59  ;;  %v3583_v59 = vpack.c.bf16 %v2353_v58, %v2352_v57 }
 0xfbd   :  { %3732 = vtanh.f32 %v1707_v25 }
 0xfc7   :  { %v3733_v61 = vpop.eup %3732 }
 0xfc8   :  { %1710 = vrot.lane.b32.xlu0 %v3733_v61, %s3780_s23  ;;  %v2355_v61 = vld [vmem:[%s4433_s6 + $0x18] sm:$0xff] }
 0xfca   :  { %v1892_v0 = vpop.permute.xlu1 %1891 }
 0xfcb   :  { %v1894_v1 = vadd.f32 %v1892_v0, %v1884_v12 }
 0xfcd   :  { %3734 = vtanh.f32 %v1894_v1 }
 0xfd7   :  { %v3735_v3 = vpop.eup %3734 }
 0xfd8   :  { %1897 = vrot.lane.b32.xlu1 %v3735_v3, %s3780_s23 }
0x103a   :  { %v1711_v10 = vpop.permute.xlu0 %1710 }
0x103b   :  { %v1713_v13 = vmul.f32 %v3729_v50, %v1711_v10  ;;  %v2436_v10 = vld [vmem:[%s4434_s7 + $0x18] sm:$0xff] }
0x103d   :  { %1907 = vrot.lane.b32.xlu0 %v1713_v13, %s3781_s24 }
0x1041   :  { %1913 = vrot.lane.b32.xlu0 %v1707_v25, %s3782_s25  ;;  %v2354_v25 = vld [vmem:[%s4433_s6 + $0x10] sm:$0xff] }
0x1042   :  { %v3586_v12 = vpack.c.bf16 %v2355_v61, %v2354_v25 }
0x1045   :  { %1918 = vrot.lane.b32.xlu0 %v1894_v1, %s3782_s25 }
0x104a   :  { %v1898_v15 = vpop.permute.xlu1 %1897 }
0x104b   :  { %v1900_v16 = vmul.f32 %v3731_v55, %v1898_v15  ;;  %v2780_v15 = vld [vmem:[%s4436_s9] sm:$0xff] }
0x104d   :  { %1902 = vrot.lane.b32.xlu1 %v1900_v16, %s3781_s24  ;;  %v2781_v16 = vld [vmem:[%s4436_s9 + $0x8] sm:$0xff] }
0x10af   :  { %v1908_v17 = vpop.permute.xlu0 %1907 }
0x10b0   :  { %1910 = vst.msk [vmem:[#allocation4] sm:$0xff] %vm60_vm0, %v1908_v17  ;;  %v4310_v17 = vpack.c.bf16 %v2436_v10, %v2435_v9 }
0x10b3   :  { %v1914_v18 = vpop.permute.xlu0 %1913 }
0x10b4   :  { %1916 = vst.msk [vmem:[#allocation5] sm:$0xff] %vm60_vm0, %v1914_v18  ;;  %v3606_v18 = vpack.c.bf16 %v2781_v16, %v2780_v15 }
0x10b7   :  { %v1919_v5 = vpop.permute.xlu0 %1918  ;;  %v1922_v21 = vld [vmem:[#allocation4] sm:$0xff] }
0x10b8   :  { %1921 = vst.msk [vmem:[#allocation5 + $0x8] sm:$0xff] %vm60_vm0, %v1919_v5  ;;  %3355 = vmatmul.mubr.msk.f32.vlgmr.msra.gmra.mrb[16].mxu1 %vm60_vm0, %v1922_v21 }
0x10b9   :  { %3566 = vmatpush3.bf16.msra.mxu1 %v3955_v49  ;;  %3365 = vmatprep.mubr.msk.f32.mxu1 %vm3778_vm1, %v3779_v20 }
0x10ba   :  { %3567 = vmatprep.subr.bf16.mxu1 %v3777_v14 }
0x10bb   :  { %v1924_v22 = vld [vmem:[#allocation5] sm:$0xff] }
0x10bc   :  { %2013 = vrot.lane.b32.xlu0 %v1924_v22, %s3781_s24  ;;  %v2783_v22 = vld [vmem:[%s4436_s9 + $0x18] sm:$0xff] }
0x10bd   :  { %3569 = vmatpush3.bf16.msra.mxu1 %v3973_v54  ;;  %v4250_v54 = vld [vmem:[%s4432_s5] ss:$0 sm:$0xff] }
0x10be   :  { %3570 = vmatprep.subr.bf16.mxu1 %v3777_v14 }
0x10bf   :  { %v1903_v24 = vpop.permute.xlu1 %1902  ;;  %v1925_v26 = vld [vmem:[#allocation5 + $0x8] sm:$0xff] }
0x10c0   :  { %1905 = vst.msk [vmem:[#allocation2 + $0x20] sm:$0xff] %vm60_vm0, %v1903_v24  ;;  %1911 = vst.msk [vmem:[#allocation4 + $0x8] sm:$0xff] %vm60_vm0, %v1903_v24  ;;  %3366 = vmatmul.mubr.msk.f32.vlgmr.msra.gmra.mrb[18].mxu1 %vm60_vm0, %v1922_v21  ;;  %2200 = vrot.lane.b32.xlu0 %v1925_v26, %s3781_s24  ;;  %v2782_v21 = vld [vmem:[%s4436_s9 + $0x10] sm:$0xff] }
0x10c1   :  { %3572 = vmatpush3.bf16.msra.mxu1 %v3992_v62  ;;  %3376 = vmatprep.mubr.msk.f32.mxu1 %vm3778_vm1, %v3779_v20  ;;  %v182_v62 = vadd.f32 %v4250_v54, %v3942_v30  ;;  %v3610_v24 = vpack.c.bf16 %v2783_v22, %v2782_v21 }
0x10c2   :  { %3573 = vmatprep.subr.bf16.mxu1 %v3777_v14 }
0x10c5   :  { %3575 = vmatpush3.bf16.msra.mxu1 %v4003_v2 }
0x10c6   :  { %3594 = vmatprep.subr.bf16.mxu1 %v3777_v14 }
0x10c7   :  { %v1923_v49 = vld [vmem:[#allocation4 + $0x8] sm:$0xff] }
0x10c8   :  { %3377 = vmatmul.mubr.msk.f32.vlgmr.msra.gmra.mrb[18].mxu1 %vm60_vm0, %v1923_v49  ;;  %v2772_v49 = vld [vmem:[#allocation2] sm:$0xff] }
0x10c9   :  { %3420 = vmatprep.mubr.msk.f32.mxu1 %vm3778_vm1, %v3779_v20  ;;  %3596 = vmatpush3.bf16.msra.mxu1 %v3583_v59 }
0x10ca   :  { %3597 = vmatprep.subr.bf16.mxu1 %v3777_v14 }
0x10cd   :  { %3599 = vmatpush3.bf16.msra.mxu1 %v3586_v12 }
0x10ce   :  { %3600 = vmatprep.subr.bf16.mxu1 %v3777_v14 }
0x112e   :  { %v2014_v47 = vpop.permute.xlu0 %2013 }
0x1132   :  { %v2201_v51 = vpop.permute.xlu0 %2200 }
0x118b   :  { %v2000_v29 = vpop.f32.mrb[16].mxu1 }
0x118c   :  { %v2004_v31 = vadd.f32 %v2000_v29, %v182_v62  ;;  %v3356_v32 = vpop.f32.mrb[17].mxu1  ;;  %v2773_v62 = vld [vmem:[#allocation2 + $0x8] sm:$0xff]  ;;  %v2774_v29 = vld [vmem:[#allocation2 + $0x10] sm:$0xff] }
0x118d   :  { %v2776_v32 = vld [vmem:[#allocation2 + $0x20] sm:$0xff] }
0x118e   :  { %3736 = vtanh.f32 %v2004_v31  ;;  %v2982_v37 = vmul.f32 -1.442695, %v2004_v31  ;;  %v2775_v31 = vld [vmem:[#allocation2 + $0x18] sm:$0xff] }
0x1198   :  { %v3737_v2 = vpop.eup %3736 }
0x1199   :  { %2018 = vrot.lane.b32.xlu1 %v3737_v2, %s3780_s23 }
0x119b   :  { %v2187_v33 = vpop.f32.mrb[18].mxu1 }
0x119c   :  { %v3623_v34 = vadd.f32 %v4036_v11, %v2187_v33  ;;  %v3378_v35 = vpop.f32.mrb[19].mxu1  ;;  %v187_v33 = vadd.f32 %v4250_v54, %v3939_v28  ;;  %v4344_v54 = vld [vmem:[%s4437_s10] ss:$0 sm:$0xff] }
0x119e   :  { %3738 = vtanh.f32 %v3623_v34  ;;  %v2986_v39 = vmul.f32 -1.442695, %v3623_v34 }
0x119f   :  { %3740 = vpow2.f32 %v2982_v37 }
0x11a0   :  { %3742 = vpow2.f32 %v2986_v39 }
0x11a8   :  { %v3739_v36 = vpop.eup %3738 }
0x11a9   :  { %2205 = vrot.lane.b32.xlu1 %v3739_v36, %s3780_s23  ;;  %v3741_v38 = vpop.eup %3740 }
0x11aa   :  { %v2008_v30 = vadd.f32 1.0, %v3741_v38  ;;  %v3743_v40 = vpop.eup %3742  ;;  %v4336_v38 = vld [vmem:[%s4435_s8] ss:$0 sm:$0xff] }
0x11ab   :  { %v2195_v44 = vadd.f32 1.0, %v3743_v40 }
0x11ac   :  { %3744 = vrcp.f32 %v2008_v30 }
0x11ad   :  { %3746 = vrcp.f32 %v2195_v44 }
0x11b6   :  { %v3745_v41 = vpop.eup %3744 }
0x11b7   :  { %v3747_v11 = vpop.eup %3746  ;;  %v2016_v48 = vmul.f32 %v3745_v41, %v2014_v47 }
0x11b8   :  { %v2203_v52 = vmul.f32 %v3747_v11, %v2201_v51 }
0x120b   :  { %v2019_v42 = vpop.permute.xlu1 %2018 }
0x120c   :  { %v2021_v43 = vmul.f32 %v3745_v41, %v2019_v42 }
0x120e   :  { %2023 = vrot.lane.b32.xlu1 %v2021_v43, %s3781_s24 }
0x121b   :  { %v2206_v45 = vpop.permute.xlu1 %2205 }
0x121c   :  { %v2208_v46 = vmul.f32 %v3747_v11, %v2206_v45 }
0x121e   :  { %2210 = vrot.lane.b32.xlu1 %v2208_v46, %s3781_s24 }
0x1280   :  { %v2024_v23 = vpop.permute.xlu1 %2023 }
0x1281   :  { %v2026_v27 = vadd.f32 %v2024_v23, %v2016_v48 }
0x1283   :  { %3748 = vtanh.f32 %v2026_v27 }
0x128d   :  { %v3749_v50 = vpop.eup %3748 }
0x128e   :  { %2029 = vrot.lane.b32.xlu0 %v3749_v50, %s3780_s23 }
0x1290   :  { %v2211_v53 = vpop.permute.xlu1 %2210 }
0x1291   :  { %v2213_v55 = vadd.f32 %v2211_v53, %v2203_v52 }
0x1293   :  { %3750 = vtanh.f32 %v2213_v55 }
0x129d   :  { %v3751_v56 = vpop.eup %3750 }
0x129e   :  { %2216 = vrot.lane.b32.xlu1 %v3751_v56, %s3780_s23 }
0x1300   :  { %v2030_v60 = vpop.permute.xlu0 %2029 }
0x1301   :  { %v2032_v63 = vmul.f32 %v3745_v41, %v2030_v60 }
0x1303   :  { %2226 = vrot.lane.b32.xlu0 %v2032_v63, %s3781_s24 }
0x1307   :  { %2232 = vrot.lane.b32.xlu0 %v2026_v27, %s3782_s25 }
0x1310   :  { %v2217_v0 = vpop.permute.xlu1 %2216 }
0x1311   :  { %v2219_v1 = vmul.f32 %v3747_v11, %v2217_v0 }
0x1313   :  { %2221 = vrot.lane.b32.xlu1 %v2219_v1, %s3781_s24 }
0x1317   :  { %2237 = vrot.lane.b32.xlu1 %v2213_v55, %s3782_s25 }
0x1375   :  { %v2227_v3 = vpop.permute.xlu0 %2226 }
0x1376   :  { %2229 = vst.msk [vmem:[#allocation4] sm:$0xff] %vm60_vm0, %v2227_v3 }
0x1379   :  { %v2233_v19 = vpop.permute.xlu0 %2232 }
0x137a   :  { %2235 = vst.msk [vmem:[#allocation5] sm:$0xff] %vm60_vm0, %v2233_v19 }
0x137d   :  { %v2241_v6 = vld [vmem:[#allocation4] sm:$0xff] }
0x137e   :  { %3388 = vmatmul.mubr.msk.f32.vlgmr.msra.gmra.mrb[14].mxu0 %vm60_vm0, %v2241_v6 }
0x137f   :  { %3584 = vmatpush3.bf16.msra.mxu0 %v3583_v59  ;;  %3398 = vmatprep.mubr.msk.f32.mxu0 %vm3778_vm1, %v3779_v20 }
0x1380   :  { %3585 = vmatprep.subr.bf16.mxu0 %v3777_v14 }
0x1381   :  { %v2243_v41 = vld [vmem:[#allocation5] sm:$0xff] }
0x1383   :  { %3587 = vmatpush3.bf16.msra.mxu0 %v3586_v12 }
0x1384   :  { %3588 = vmatprep.subr.bf16.mxu0 %v3777_v14 }
0x1385   :  { %v2222_v13 = vpop.permute.xlu1 %2221 }
0x1386   :  { %2224 = vst.msk [vmem:[#allocation2 + $0x28] sm:$0xff] %vm60_vm0, %v2222_v13  ;;  %2230 = vst.msk [vmem:[#allocation4 + $0x8] sm:$0xff] %vm60_vm0, %v2222_v13  ;;  %3399 = vmatmul.mubr.msk.f32.vlgmr.msra.gmra.mrb[16].mxu0 %vm60_vm0, %v2241_v6 }
0x1387   :  { %3590 = vmatpush3.bf16.msra.mxu0 %v4291_v8  ;;  %3409 = vmatprep.mubr.msk.f32.mxu0 %vm3778_vm1, %v3779_v20 }
0x1388   :  { %3591 = vmatprep.subr.bf16.mxu0 %v3777_v14 }
0x1389   :  { %v2238_v5 = vpop.permute.xlu1 %2237 }
0x138a   :  { %2240 = vst.msk [vmem:[#allocation5 + $0x8] sm:$0xff] %vm60_vm0, %v2238_v5 }
0x138b   :  { %3593 = vmatpush3.bf16.msra.mxu0 %v4310_v17 }
0x138c   :  { %3607 = vmatprep.subr.bf16.mxu0 %v3606_v18 }
0x138d   :  { %v2242_v26 = vld [vmem:[#allocation4 + $0x8] sm:$0xff] }
0x138e   :  { %3410 = vmatmul.mubr.msk.f32.vlgmr.msra.gmra.mrb[16].mxu0 %vm60_vm0, %v2242_v26  ;;  %v2777_v2 = vld [vmem:[#allocation2 + $0x28] sm:$0xff] }
0x138f   :  { %3609 = vmatpush3.bf16.msra.mxu0 %v3606_v18  ;;  %3442 = vmatprep.mubr.msk.f32.mxu0 %vm60_vm0, %v2772_v49 }
0x1390   :  { %3611 = vmatprep.subr.bf16.mxu0 %v3610_v24 }
0x1391   :  { %v2244_v28 = vld [vmem:[#allocation5 + $0x8] sm:$0xff] }
0x1393   :  { %3613 = vmatpush3.bf16.msra.mxu0 %v3610_v24 }
0x1396   :  { %3443 = vmatmul.mubr.msk.f32.vlgmr.msra.gmra.mrb[18].mxu0 %vm60_vm0, %v2773_v62 }
0x1397   :  { %3445 = vmatprep.mubr.msk.f32.mxu0 %vm60_vm0, %v2774_v29 }
0x139a   :  { %3446 = vmatmul.mubr.msk.f32.gmra.mrb[20].mxu0 %vm60_vm0, %v2775_v31 }
0x139b   :  { %3448 = vmatprep.mubr.msk.f32.mxu0 %vm60_vm0, %v2776_v32 }
0x139e   :  { %3449 = vmatmul.mubr.msk.f32.gmra.mrb[22].mxu0 %vm60_vm0, %v2777_v2 }
0x1451   :  { %v2319_v34 = vpop.f32.mrb[14].mxu0 }
0x1452   :  { %v2323_v35 = vadd.f32 %v2319_v34, %v187_v33  ;;  %v3389_v36 = vpop.f32.mrb[15].mxu0 }
0x1454   :  { %3752 = vtanh.f32 %v2323_v35  ;;  %v2988_v53 = vmul.f32 -1.442695, %v2323_v35 }
0x145e   :  { %v3753_v37 = vpop.eup %3752 }
0x145f   :  { %2337 = vrot.lane.b32.xlu0 %v3753_v37, %s3780_s23 }
0x1461   :  { %v2506_v39 = vpop.f32.mrb[16].mxu0 }
0x1462   :  { %v3624_v30 = vadd.f32 %v4336_v38, %v2506_v39  ;;  %v3411_v40 = vpop.f32.mrb[17].mxu0 }
0x1463   :  { %2332 = vrot.lane.b32.xlu0 %v2243_v41, %s3781_s24 }
0x1464   :  { %3754 = vtanh.f32 %v3624_v30  ;;  %v2992_v56 = vmul.f32 -1.442695, %v3624_v30 }
0x1465   :  { %3756 = vpow2.f32 %v2988_v53 }
0x1466   :  { %3758 = vpow2.f32 %v2992_v56 }
0x1467   :  { %2519 = vrot.lane.b32.xlu0 %v2244_v28, %s3781_s24 }
0x1469   :  { %v3444_v42 = vpop.f32.mrb[18].mxu0 }
0x146a   :  { %v2887_v43 = vadd.f32 %v3444_v42, %v4344_v54  ;;  %v2881_v44 = vpop.f32.mrb[19].mxu0 }
0x146b   :  { %v2882_v11 = vadd.f32 %v4344_v54, %v2881_v44 }
0x146c   :  { %2921 = vst [vmem:[%s4438_s11 + $0x8] sm:$0xff] %v2887_v43 }
0x146d   :  { %2920 = vst [vmem:[%s4438_s11] sm:$0xff] %v2882_v11  ;;  %v3447_v45 = vpop.f32.mrb[20].mxu0 }
0x146e   :  { %v3755_v46 = vpop.eup %3754  ;;  %v2897_v47 = vadd.f32 %v3447_v45, %v4344_v54  ;;  %v2891_v48 = vpop.f32.mrb[21].mxu0 }
0x146f   :  { %v2892_v23 = vadd.f32 %v4344_v54, %v2891_v48  ;;  %2524 = vrot.lane.b32.xlu1 %v3755_v46, %s3780_s23  ;;  %v3757_v55 = vpop.eup %3756 }
0x1470   :  { %2923 = vst [vmem:[%s4438_s11 + $0x18] sm:$0xff] %v2897_v47  ;;  %v2327_v57 = vadd.f32 1.0, %v3757_v55  ;;  %v3759_v58 = vpop.eup %3758 }
0x1471   :  { %2922 = vst [vmem:[%s4438_s11 + $0x10] sm:$0xff] %v2892_v23  ;;  %v3450_v27 = vpop.f32.mrb[22].mxu0  ;;  %v2514_v61 = vadd.f32 1.0, %v3759_v58 }
0x1472   :  { %v2907_v50 = vadd.f32 %v3450_v27, %v4344_v54  ;;  %v2901_v51 = vpop.f32.mrb[23].mxu0  ;;  %3760 = vrcp.f32 %v2327_v57 }
0x1473   :  { %v2902_v52 = vadd.f32 %v4344_v54, %v2901_v51  ;;  %3762 = vrcp.f32 %v2514_v61 }
0x1474   :  { %2925 = vst [vmem:[%s4438_s11 + $0x28] sm:$0xff] %v2907_v50 }
0x1475   :  { %2924 = vst [vmem:[%s4438_s11 + $0x20] sm:$0xff] %v2902_v52 }
0x147c   :  { %v3761_v59 = vpop.eup %3760 }
0x147d   :  { %v3763_v63 = vpop.eup %3762 }
0x14d1   :  { %v2338_v60 = vpop.permute.xlu0 %2337 }
0x14d2   :  { %v2340_v25 = vmul.f32 %v3761_v59, %v2338_v60 }
0x14d4   :  { %2342 = vrot.lane.b32.xlu1 %v2340_v25, %s3781_s24 }
0x14d5   :  { %v2333_v1 = vpop.permute.xlu0 %2332 }
0x14d6   :  { %v2335_v3 = vmul.f32 %v3761_v59, %v2333_v1 }
0x14d9   :  { %v2520_v7 = vpop.permute.xlu0 %2519 }
0x14da   :  { %v2522_v9 = vmul.f32 %v3763_v63, %v2520_v7 }
0x14e1   :  { %v2525_v12 = vpop.permute.xlu1 %2524 }
0x14e2   :  { %v2527_v0 = vmul.f32 %v3763_v63, %v2525_v12 }
0x14e4   :  { %2529 = vrot.lane.b32.xlu1 %v2527_v0, %s3781_s24 }
0x1546   :  { %v2343_v19 = vpop.permute.xlu1 %2342 }
0x1547   :  { %v2345_v6 = vadd.f32 %v2343_v19, %v2335_v3 }
0x1549   :  { %3764 = vtanh.f32 %v2345_v6 }
0x1553   :  { %v3765_v4 = vpop.eup %3764 }
0x1554   :  { %2348 = vrot.lane.b32.xlu0 %v3765_v4, %s3780_s23 }
0x1556   :  { %v2530_v10 = vpop.permute.xlu1 %2529 }
0x1557   :  { %v2532_v13 = vadd.f32 %v2530_v10, %v2522_v9 }
0x1559   :  { %3766 = vtanh.f32 %v2532_v13 }
0x1563   :  { %v3767_v15 = vpop.eup %3766 }
0x1564   :  { %2535 = vrot.lane.b32.xlu1 %v3767_v15, %s3780_s23 }
0x15c6   :  { %v2349_v16 = vpop.permute.xlu0 %2348 }
0x15c7   :  { %v2351_v18 = vmul.f32 %v3761_v59, %v2349_v16 }
0x15c9   :  { %2545 = vrot.lane.b32.xlu0 %v2351_v18, %s3781_s24 }
0x15cd   :  { %2556 = vrot.lane.b32.xlu0 %v2532_v13, %s3782_s25 }
0x15d6   :  { %v2536_v5 = vpop.permute.xlu1 %2535 }
0x15d7   :  { %v2538_v21 = vmul.f32 %v3763_v63, %v2536_v5 }
0x15d9   :  { %2540 = vrot.lane.b32.xlu1 %v2538_v21, %s3781_s24 }
0x163b   :  { %v2546_v22 = vpop.permute.xlu0 %2545 }
0x163c   :  { %2548 = vst.msk [vmem:[#allocation4] sm:$0xff] %vm60_vm0, %v2546_v22 }
0x163f   :  { %v2557_v24 = vpop.permute.xlu0 %2556 }
0x1640   :  { %2559 = vst.msk [vmem:[#allocation5 + $0x8] sm:$0xff] %vm60_vm0, %v2557_v24 }
0x1643   :  { %v2764_v26 = vld [vmem:[#allocation4] sm:$0xff] }
0x1644   :  { %2766 = vst.msk [vmem:[%s4439_s12] sm:$0xff] %vm60_vm0, %v2764_v26  ;;  %3421 = vmatmul.mubr.msk.f32.vlgmr.msra.gmra.mrb[20].mxu1 %vm60_vm0, %v2764_v26 }
0x1645   :  { %3602 = vmatpush3.bf16.msra.mxu1 %v4291_v8  ;;  %3431 = vmatprep.mubr.msk.f32.mxu1 %vm3778_vm1, %v3779_v20 }
0x1646   :  { %3603 = vmatprep.subr.bf16.mxu1 %v3777_v14 }
0x1647   :  { %v2562_v49 = vld [vmem:[#allocation5 + $0x8] sm:$0xff] }
0x1648   :  { %2733 = vrot.lane.b32.xlu0 %v2562_v49, %s3781_s24 }
0x1649   :  { %3605 = vmatpush3.bf16.msra.mxu1 %v4310_v17 }
0x164b   :  { %v2541_v62 = vpop.permute.xlu1 %2540 }
0x164c   :  { %2543 = vst.msk [vmem:[#allocation2 + $0x30] sm:$0xff] %vm60_vm0, %v2541_v62  ;;  %2549 = vst.msk [vmem:[#allocation4 + $0x8] sm:$0xff] %vm60_vm0, %v2541_v62 }
0x1653   :  { %v2561_v29 = vld [vmem:[#allocation4 + $0x8] sm:$0xff]  ;;  %v2778_v31 = vld [vmem:[#allocation2 + $0x30] sm:$0xff] }
0x1654   :  { %3432 = vmatmul.mubr.msk.f32.vlgmr.msra.gmra.mrb[20].mxu1 %vm60_vm0, %v2561_v29  ;;  %3451 = vmatprep.mubr.msk.f32.mxu0 %vm60_vm0, %v2778_v31 }
0x16ba   :  { %v2734_v37 = vpop.permute.xlu0 %2733 }
0x1727   :  { %v2720_v8 = vpop.f32.mrb[20].mxu1 }
0x1728   :  { %v3625_v20 = vadd.f32 %v4336_v38, %v2720_v8  ;;  %v3433_v14 = vpop.f32.mrb[21].mxu1 }
0x172a   :  { %3768 = vtanh.f32 %v3625_v20  ;;  %v2996_v17 = vmul.f32 -1.442695, %v3625_v20 }
0x172c   :  { %3770 = vpow2.f32 %v2996_v17 }
0x1734   :  { %v3769_v32 = vpop.eup %3768 }
0x1735   :  { %2738 = vrot.lane.b32.xlu1 %v3769_v32, %s3780_s23 }
0x1736   :  { %v3771_v2 = vpop.eup %3770 }
0x1737   :  { %v2728_v33 = vadd.f32 1.0, %v3771_v2 }
0x1739   :  { %3772 = vrcp.f32 %v2728_v33 }
0x1743   :  { %v3773_v34 = vpop.eup %3772 }
0x1744   :  { %v2736_v39 = vmul.f32 %v3773_v34, %v2734_v37 }
0x17a7   :  { %v2739_v35 = vpop.permute.xlu1 %2738 }
0x17a8   :  { %v2741_v36 = vmul.f32 %v3773_v34, %v2739_v35 }
0x17aa   :  { %2743 = vrot.lane.b32.xlu1 %v2741_v36, %s3781_s24 }
0x181c   :  { %v2744_v30 = vpop.permute.xlu1 %2743 }
0x181d   :  { %v2746_v40 = vadd.f32 %v2744_v30, %v2736_v39 }
0x181f   :  { %3774 = vtanh.f32 %v2746_v40 }
0x1829   :  { %v3775_v38 = vpop.eup %3774 }
0x182a   :  { %2749 = vrot.lane.b32.xlu0 %v3775_v38, %s3780_s23 }
0x182e   :  { %2551 = vrot.lane.b32.xlu0 %v2345_v6, %s3782_s25 }
0x189c   :  { %v2750_v41 = vpop.permute.xlu0 %2749 }
0x189d   :  { %v2752_v28 = vmul.f32 %v3773_v34, %v2750_v41 }
0x189f   :  { %2754 = vrot.lane.b32.xlu1 %v2752_v28, %s3781_s24 }
0x18a0   :  { %v2552_v42 = vpop.permute.xlu0 %2551 }
0x18a1   :  { %2554 = vst.msk [vmem:[#allocation5] sm:$0xff] %vm60_vm0, %v2552_v42 }
0x18a3   :  { %2760 = vrot.lane.b32.xlu1 %v2746_v40, %s3782_s25 }
0x18a8   :  { %v2768_v43 = vld [vmem:[#allocation5] sm:$0xff] }
0x18a9   :  { %2770 = vst.msk [vmem:[%s4440_s13] sm:$0xff] %vm60_vm0, %v2768_v43 }
0x1911   :  { %v2755_v44 = vpop.permute.xlu1 %2754 }
0x1912   :  { %2757 = vst.msk [vmem:[#allocation2 + $0x38] sm:$0xff] %vm60_vm0, %v2755_v44  ;;  %2758 = vst.msk [vmem:[#allocation4 + $0x8] sm:$0xff] %vm60_vm0, %v2755_v44 }
0x1915   :  { %v2761_v11 = vpop.permute.xlu1 %2760 }
0x1916   :  { %2763 = vst.msk [vmem:[#allocation5 + $0x8] sm:$0xff] %vm60_vm0, %v2761_v11 }
0x1919   :  { %v2765_v45 = vld [vmem:[#allocation4 + $0x8] sm:$0xff]  ;;  %v2779_v46 = vld [vmem:[#allocation2 + $0x38] sm:$0xff] }
0x191a   :  { %2767 = vst.msk [vmem:[%s4439_s12 + $0x8] sm:$0xff] %vm60_vm0, %v2765_v45  ;;  %3452 = vmatmul.mubr.msk.f32.gmra.mrb[24].mxu0 %vm60_vm0, %v2779_v46 }
0x191d   :  { %v2769_v47 = vld [vmem:[#allocation5 + $0x8] sm:$0xff] }
0x191e   :  { %2771 = vst.msk [vmem:[%s4440_s13 + $0x8] sm:$0xff] %vm60_vm0, %v2769_v47 }
0x19ed   :  { %v3453_v48 = vpop.f32.mrb[24].mxu0 }
0x19ee   :  { %v2917_v23 = vadd.f32 %v3453_v48, %v4344_v54  ;;  %v2911_v27 = vpop.f32.mrb[25].mxu0 }
0x19ef   :  { %v2912_v50 = vadd.f32 %v4344_v54, %v2911_v27 }
0x19f0   :  { %2927 = vst [vmem:[%s4438_s11 + $0x38] sm:$0xff] %v2917_v23 }
0x19f1   :  { %2926 = vst [vmem:[%s4438_s11 + $0x30] sm:$0xff] %v2912_v50 }

</bundles_post_ra>
